<compile_context>
chip_gen: v7x
topology: tpu7x:2x2x1
jax: 0.10.0
libtpu: 0.0.40
codegen_flags: <defaults>
</compile_context>

<pallas_src>
import jax
import jax.numpy as jnp
import numpy as np
from jax import lax
from jax.experimental import pallas as pl
from jax.experimental.pallas import tpu as pltpu


def _round_up(a, m):
    return (a + m - 1) // m * m


# -------------------------------------------------------------------------
# Pallas kernel: entire recurrence in one invocation (grid=(1,)).
# -------------------------------------------------------------------------
def _mlstm_kernel(gx_ref, z0_ref, wh_ref, wz_ref, w1_ref, b1_ref, w2_ref,
                  b2_ref, out_ref):
    T = gx_ref.shape[0]          # static
    Bp = gx_ref.shape[1]
    Hp = wh_ref.shape[0]         # lane-aligned (multiple of 128) hidden size

    # Loop-invariant loads / broadcasts, hoisted once.
    wh = wh_ref[...]             # (Hp, 4Hp)
    wz = wz_ref[...]             # (1, 4Hp)
    w1 = w1_ref[...]             # (Hp, Fp)
    b1 = b1_ref[...]             # (1, Fp)
    w2 = w2_ref[...]             # (1, Fp)  (output-head row vector)
    b2 = b2_ref[...]             # (1, 1)

    h0 = jnp.zeros((Bp, Hp), jnp.float32)
    c0 = jnp.zeros((Bp, Hp), jnp.float32)
    z0 = z0_ref[...].astype(jnp.float32)      # (Bp, 1)

    def step(t, carry):
        h, c, z = carry
        # gates = gx_t (precomputed x@Wx_x + b) + h@Wh + z * w_z
        gates = (gx_ref[t]
                 + jnp.dot(h, wh, preferred_element_type=jnp.float32)
                 + z * wz)                                     # (Bp, 4Hp)

        # Lane-aligned 128-wide gate regions (no relayout).
        i_g = jax.nn.sigmoid(gates[:, 0 * Hp:1 * Hp])
        f_g = jax.nn.sigmoid(gates[:, 1 * Hp:2 * Hp])
        g_g = jnp.tanh(gates[:, 2 * Hp:3 * Hp])
        o_g = jax.nn.sigmoid(gates[:, 3 * Hp:4 * Hp])

        c_t = f_g * c + i_g * g_g
        h_t = o_g * jnp.tanh(c_t)

        # Monotone head: relu MLP; final (F,1) matmul done as VPU mul + reduce.
        hid = jax.nn.relu(
            jnp.dot(h_t, w1, preferred_element_type=jnp.float32) + b1)
        delta = jax.nn.relu(
            jnp.sum(hid * w2, axis=-1, keepdims=True) + b2)    # (Bp, 1)
        z_t = z + delta

        out_ref[t] = z_t.astype(out_ref.dtype)                 # VMEM store
        return (h_t, c_t, z_t)

    unroll = T if T <= 16 else 8
    lax.fori_loop(0, T, step, (h0, c0, z0), unroll=unroll)


# -------------------------------------------------------------------------
# Wrapper: weight repacking (lane-aligned gates), hoisted projection, padding.
# -------------------------------------------------------------------------
def _pad_gates(w, H, Hp):
    """(..., 4H) -> (..., 4Hp): gate g's H columns placed at [g*Hp, g*Hp+H)."""
    parts = []
    for g in range(4):
        blk = w[..., g * H:(g + 1) * H]
        pad = [(0, 0)] * (w.ndim - 1) + [(0, Hp - H)]
        parts.append(jnp.pad(blk, pad))
    return jnp.concatenate(parts, axis=-1)


def monotonic_density_regressor_v2(x, wh0, z0, params):
    """x: (B, T, Dd), wh0: (B, Dw), z0: (B, 1) -> (B, T, 1)."""
    B, T, Dd = x.shape
    Dw = wh0.shape[-1]
    Din = Dd + Dw

    wx, wh, b, w1, b1, w2, b2 = (params[k] for k in
                                 ("wx", "wh", "b", "w1", "b1", "w2", "b2"))
    H = wh.shape[0]
    F = w1.shape[1]

    Hp = _round_up(H, 128)     # lane-aligned gate blocks
    Fp = _round_up(F, 128)     # lane-dense hidden of the head
    Bp = _round_up(B, 8)       # sublane-dense batch

    # Split Wx into the x-projection (hoisted) and the z-feedback row.
    wx_x = wx[:Din]                       # (Din, 4H)
    w_z = wx[Din:Din + 1]                 # (1, 4H)

    wx_xp = _pad_gates(wx_x, H, Hp)                               # (Din, 4Hp)
    w_zp = _pad_gates(w_z, H, Hp)                                 # (1, 4Hp)
    b_p = _pad_gates(b, H, Hp)                                    # (1, 4Hp)
    wh_p = jnp.pad(_pad_gates(wh, H, Hp), ((0, Hp - H), (0, 0)))  # (Hp, 4Hp)
    w1_p = jnp.pad(w1, ((0, Hp - H), (0, Fp - F)))                # (Hp, Fp)
    b1_p = jnp.pad(b1, ((0, 0), (0, Fp - F)))                     # (1, Fp)
    w2_p = jnp.pad(w2.T, ((0, 0), (0, Fp - F)))                   # (1, Fp)
    b2_p = b2                                                     # (1, 1)

    # Hoisted input projection (one big matmul, bias fused), time-major.
    x_full = jnp.concatenate(
        [x, jnp.broadcast_to(wh0[:, None, :], (B, T, Dw))], axis=-1)
    gx = jnp.einsum('btd,dg->tbg', x_full.astype(jnp.float32),
                    wx_xp.astype(jnp.float32)) + b_p              # (T, B, 4Hp)
    gx = jnp.pad(gx, ((0, 0), (0, Bp - B), (0, 0)))               # (T, Bp, 4Hp)
    z0_p = jnp.pad(z0.astype(jnp.float32), ((0, Bp - B), (0, 0))) # (Bp, 1)

    full = lambda shape: pl.BlockSpec(shape, lambda i: (0,) * len(shape))

    out_tm = pl.pallas_call(
        _mlstm_kernel,
        out_shape=jax.ShapeDtypeStruct((T, Bp, 1), x.dtype),
        grid=(1,),
        in_specs=[
            full((T, Bp, 4 * Hp)),    # gx (whole sequence resident in VMEM)
            full((Bp, 1)),            # z0
            full((Hp, 4 * Hp)),       # Wh
            full((1, 4 * Hp)),        # w_z
            full((Hp, Fp)),           # W1
            full((1, Fp)),            # b1
            full((1, Fp)),            # W2 (row)
            full((1, 1)),             # b2
        ],
        out_specs=full((T, Bp, 1)),
        compiler_params=pltpu.CompilerParams(
            dimension_semantics=("arbitrary",)),
    )(gx, z0_p, wh_p, w_zp, w1_p, b1_p, w2_p, b2_p)

    return jnp.transpose(out_tm, (1, 0, 2))[:B]                   # (B, T, 1)


# -------------------------------------------------------------------------
# Pure-JAX reference (same math, lax.scan, unpadded weights).
# -------------------------------------------------------------------------
def reference_forward(x, wh0, z0, params):
    B, T, _ = x.shape
    Dw = wh0.shape[-1]
    xf = jnp.concatenate(
        [x, jnp.broadcast_to(wh0[:, None, :], (B, T, Dw))], axis=-1)
    H = params["wh"].shape[0]

    def step(carry, x_t):
        h, c, z = carry
        u = jnp.concatenate([x_t, z], axis=-1)
        gates = u @ params["wx"] + h @ params["wh"] + params["b"]
        i = jax.nn.sigmoid(gates[:, 0 * H:1 * H])
        f = jax.nn.sigmoid(gates[:, 1 * H:2 * H])
        g = jnp.tanh(gates[:, 2 * H:3 * H])
        o = jax.nn.sigmoid(gates[:, 3 * H:4 * H])
        c_t = f * c + i * g
        h_t = o * jnp.tanh(c_t)
        hid = jax.nn.relu(h_t @ params["w1"] + params["b1"])
        delta = jax.nn.relu(hid @ params["w2"] + params["b2"])
        z_t = z + delta
        return (h_t, c_t, z_t), z_t

    h0 = jnp.zeros((B, H), jnp.float32)
    c0 = jnp.zeros((B, H), jnp.float32)
    (_, _, _), zs = lax.scan(step, (h0, c0, z0), jnp.transpose(xf, (1, 0, 2)))
    return jnp.transpose(zs, (1, 0, 2))


# -------------------------------------------------------------------------
# Deterministic parameter construction (synthetic weights, PyTorch-like init).
# -------------------------------------------------------------------------
def make_params(key, din, hidden, forward, output=1):
    k = 1.0 / np.sqrt(hidden)
    keys = jax.random.split(key, 7)
    u = lambda kk, shape: jax.random.uniform(kk, shape, jnp.float32, -k, k)
    return {
        "wx": u(keys[0], (din + output, 4 * hidden)),
        "wh": u(keys[1], (hidden, 4 * hidden)),
        "b":  u(keys[2], (1, 4 * hidden)),
        "w1": u(keys[3], (hidden, forward)),
        "b1": u(keys[4], (1, forward)),
        "w2": u(keys[5], (forward, output)),
        "b2": u(keys[6], (1, output)),
    }


if __name__ == "__main__":
    # Small shapes consistent with the module's forward.
    B, T = 2, 8
    n_depth_features = 4
    weather_embeddings_size = 4
    hidden_size = 32
    forward_size = 16

    key = jax.random.PRNGKey(0)
    kx, kw, kz, kp = jax.random.split(key, 4)
    x = jax.random.normal(kx, (B, T, n_depth_features), jnp.float32)
    wh0 = jax.random.normal(kw, (B, weather_embeddings_size), jnp.float32)
    z0 = jax.random.normal(kz, (B, 1), jnp.float32)

    params = make_params(kp, n_depth_features + weather_embeddings_size,
                         hidden_size, forward_size)

    out = jax.jit(monotonic_density_regressor_v2)(x, wh0, z0, params)
    out = jax.block_until_ready(out)

    ref = reference_forward(x, wh0, z0, params)
    np.testing.assert_allclose(np.asarray(out), np.asarray(ref),
                               rtol=1e-4, atol=1e-5)
    assert out.shape == (B, T, 1)

    print("KERNEL_OK")
</pallas_src>

<mosaic_0001>
module attributes {stable_mosaic.version = 11 : i64} {
  func.func @_mlstm_kernel(%arg0: i32, %arg1: memref<8x8x512xf32, #tpu.memory_space<vmem>>, %arg2: memref<8x1xf32, #tpu.memory_space<vmem>>, %arg3: memref<128x512xf32, #tpu.memory_space<vmem>>, %arg4: memref<1x512xf32, #tpu.memory_space<vmem>>, %arg5: memref<128x128xf32, #tpu.memory_space<vmem>>, %arg6: memref<1x128xf32, #tpu.memory_space<vmem>>, %arg7: memref<1x128xf32, #tpu.memory_space<vmem>>, %arg8: memref<1x1xf32, #tpu.memory_space<vmem>>, %arg9: memref<8x8x1xf32, #tpu.memory_space<vmem>>) attributes {dimension_semantics = [#tpu.dimension_semantics<arbitrary>], iteration_bounds = array<i64: 1>, scalar_prefetch = 0 : i64, scratch_operands = 0 : i64, tpu.core_type = #tpu.core_type<tc>, window_params = [{pipeline_mode = #tpu.pipeline_mode<synchronous>, transform_indices = @transform_0, window_bounds = array<i64: 8, 8, 512>}, {pipeline_mode = #tpu.pipeline_mode<synchronous>, transform_indices = @transform_1, window_bounds = array<i64: 8, 1>}, {pipeline_mode = #tpu.pipeline_mode<synchronous>, transform_indices = @transform_2, window_bounds = array<i64: 128, 512>}, {pipeline_mode = #tpu.pipeline_mode<synchronous>, transform_indices = @transform_3, window_bounds = array<i64: 1, 512>}, {pipeline_mode = #tpu.pipeline_mode<synchronous>, transform_indices = @transform_4, window_bounds = array<i64: 128, 128>}, {pipeline_mode = #tpu.pipeline_mode<synchronous>, transform_indices = @transform_5, window_bounds = array<i64: 1, 128>}, {pipeline_mode = #tpu.pipeline_mode<synchronous>, transform_indices = @transform_6, window_bounds = array<i64: 1, 128>}, {pipeline_mode = #tpu.pipeline_mode<synchronous>, transform_indices = @transform_7, window_bounds = array<i64: 1, 1>}, {pipeline_mode = #tpu.pipeline_mode<synchronous>, transform_indices = @transform_8, window_bounds = array<i64: 8, 8, 1>}]} {
    %c0 = arith.constant 0 : index
    %c0_0 = arith.constant 0 : index
    %0 = vector.load %arg3[%c0, %c0_0] : memref<128x512xf32, #tpu.memory_space<vmem>>, vector<128x512xf32>
    %c0_1 = arith.constant 0 : index
    %c0_2 = arith.constant 0 : index
    %1 = vector.load %arg4[%c0_1, %c0_2] : memref<1x512xf32, #tpu.memory_space<vmem>>, vector<1x512xf32>
    %c0_3 = arith.constant 0 : index
    %c0_4 = arith.constant 0 : index
    %2 = vector.load %arg5[%c0_3, %c0_4] : memref<128x128xf32, #tpu.memory_space<vmem>>, vector<128x128xf32>
    %c0_5 = arith.constant 0 : index
    %c0_6 = arith.constant 0 : index
    %3 = vector.load %arg6[%c0_5, %c0_6] : memref<1x128xf32, #tpu.memory_space<vmem>>, vector<1x128xf32>
    %c0_7 = arith.constant 0 : index
    %c0_8 = arith.constant 0 : index
    %4 = vector.load %arg7[%c0_7, %c0_8] : memref<1x128xf32, #tpu.memory_space<vmem>>, vector<1x128xf32>
    %c0_9 = arith.constant 0 : index
    %c0_10 = arith.constant 0 : index
    %5 = vector.load %arg8[%c0_9, %c0_10] : memref<1x1xf32, #tpu.memory_space<vmem>>, vector<1x1xf32>
    %cst = arith.constant 0.000000e+00 : f32
    %6 = vector.broadcast %cst : f32 to vector<8x128xf32>
    %cst_11 = arith.constant 0.000000e+00 : f32
    %7 = vector.broadcast %cst_11 : f32 to vector<8x128xf32>
    %c0_12 = arith.constant 0 : index
    %c0_13 = arith.constant 0 : index
    %8 = vector.load %arg2[%c0_12, %c0_13] : memref<8x1xf32, #tpu.memory_space<vmem>>, vector<8x1xf32>
    %c0_i32 = arith.constant 0 : i32
    %9 = arith.index_cast %c0_i32 : i32 to index
    %c0_14 = arith.constant 0 : index
    %c0_15 = arith.constant 0 : index
    %10 = vector.load %arg1[%9, %c0_14, %c0_15] : memref<8x8x512xf32, #tpu.memory_space<vmem>>, vector<1x8x512xf32>
    %11 = vector.shape_cast %10 : vector<1x8x512xf32> to vector<8x512xf32>
    %cst_16 = arith.constant dense<0.000000e+00> : vector<8x512xf32>
    %12 = tpu.matmul %6, %0, %cst_16 {dimension_numbers = #tpu.dot_dimension_numbers<[1], [0], [0], [1], [0, 0, 1, 1], [], []>} : vector<8x128xf32>, vector<128x512xf32>, vector<8x512xf32> -> vector<8x512xf32>
    %13 = arith.addf %11, %12 : vector<8x512xf32>
    %14 = vector.broadcast %8 : vector<8x1xf32> to vector<8x512xf32>
    %15 = vector.broadcast %1 : vector<1x512xf32> to vector<8x512xf32>
    %16 = arith.mulf %14, %15 : vector<8x512xf32>
    %17 = arith.addf %13, %16 : vector<8x512xf32>
    %18 = vector.extract_strided_slice %17 {offsets = [0, 0], sizes = [8, 128], strides = [1, 1]} : vector<8x512xf32> to vector<8x128xf32>
    %19 = arith.negf %18 : vector<8x128xf32>
    %20 = math.exp %19 : vector<8x128xf32>
    %cst_17 = arith.constant 1.000000e+00 : f32
    %21 = vector.broadcast %cst_17 : f32 to vector<8x128xf32>
    %22 = arith.addf %21, %20 : vector<8x128xf32>
    %23 = arith.divf %21, %22 : vector<8x128xf32>
    %24 = vector.extract_strided_slice %17 {offsets = [0, 128], sizes = [8, 128], strides = [1, 1]} : vector<8x512xf32> to vector<8x128xf32>
    %25 = arith.negf %24 : vector<8x128xf32>
    %26 = math.exp %25 : vector<8x128xf32>
    %cst_18 = arith.constant 1.000000e+00 : f32
    %27 = vector.broadcast %cst_18 : f32 to vector<8x128xf32>
    %28 = arith.addf %27, %26 : vector<8x128xf32>
    %29 = arith.divf %27, %28 : vector<8x128xf32>
    %30 = vector.extract_strided_slice %17 {offsets = [0, 256], sizes = [8, 128], strides = [1, 1]} : vector<8x512xf32> to vector<8x128xf32>
    %31 = math.tanh %30 : vector<8x128xf32>
    %32 = vector.extract_strided_slice %17 {offsets = [0, 384], sizes = [8, 128], strides = [1, 1]} : vector<8x512xf32> to vector<8x128xf32>
    %33 = arith.negf %32 : vector<8x128xf32>
    %34 = math.exp %33 : vector<8x128xf32>
    %cst_19 = arith.constant 1.000000e+00 : f32
    %35 = vector.broadcast %cst_19 : f32 to vector<8x128xf32>
    %36 = arith.addf %35, %34 : vector<8x128xf32>
    %37 = arith.divf %35, %36 : vector<8x128xf32>
    %38 = arith.mulf %29, %7 : vector<8x128xf32>
    %39 = arith.mulf %23, %31 : vector<8x128xf32>
    %40 = arith.addf %38, %39 : vector<8x128xf32>
    %41 = math.tanh %40 : vector<8x128xf32>
    %42 = arith.mulf %37, %41 : vector<8x128xf32>
    %cst_20 = arith.constant dense<0.000000e+00> : vector<8x128xf32>
    %43 = tpu.matmul %42, %2, %cst_20 {dimension_numbers = #tpu.dot_dimension_numbers<[1], [0], [0], [1], [0, 0, 1, 1], [], []>} : vector<8x128xf32>, vector<128x128xf32>, vector<8x128xf32> -> vector<8x128xf32>
    %44 = vector.broadcast %3 : vector<1x128xf32> to vector<8x128xf32>
    %45 = arith.addf %43, %44 : vector<8x128xf32>
    %cst_21 = arith.constant 0.000000e+00 : f32
    %46 = vector.broadcast %cst_21 : f32 to vector<8x128xf32>
    %47 = arith.maximumf %45, %46 : vector<8x128xf32>
    %48 = vector.broadcast %4 : vector<1x128xf32> to vector<8x128xf32>
    %49 = arith.mulf %47, %48 : vector<8x128xf32>
    %cst_22 = arith.constant dense<0.000000e+00> : vector<8xf32>
    %50 = vector.multi_reduction <add>, %49, %cst_22 [1] : vector<8x128xf32> to vector<8xf32>
    %51 = vector.shape_cast %50 : vector<8xf32> to vector<8x1xf32>
    %52 = vector.broadcast %5 : vector<1x1xf32> to vector<8x1xf32>
    %53 = arith.addf %51, %52 : vector<8x1xf32>
    %cst_23 = arith.constant 0.000000e+00 : f32
    %54 = vector.broadcast %cst_23 : f32 to vector<8x1xf32>
    %55 = arith.maximumf %53, %54 : vector<8x1xf32>
    %56 = arith.addf %8, %55 : vector<8x1xf32>
    %57 = arith.index_cast %c0_i32 : i32 to index
    %c0_24 = arith.constant 0 : index
    %c0_25 = arith.constant 0 : index
    %58 = vector.load %arg9[%57, %c0_24, %c0_25] : memref<8x8x1xf32, #tpu.memory_space<vmem>>, vector<1x8x1xf32>
    %59 = vector.shape_cast %58 : vector<1x8x1xf32> to vector<8x1xf32>
    %60 = vector.shape_cast %56 : vector<8x1xf32> to vector<1x8x1xf32>
    tpu.vector_store %arg9[%57, %c0_24, %c0_25], %60 {strides = array<i32>} : memref<8x8x1xf32, #tpu.memory_space<vmem>>, vector<1x8x1xf32>,
    %c1_i32 = arith.constant 1 : i32
    %61 = arith.index_cast %c1_i32 : i32 to index
    %c0_26 = arith.constant 0 : index
    %c0_27 = arith.constant 0 : index
    %62 = vector.load %arg1[%61, %c0_26, %c0_27] : memref<8x8x512xf32, #tpu.memory_space<vmem>>, vector<1x8x512xf32>
    %63 = vector.shape_cast %62 : vector<1x8x512xf32> to vector<8x512xf32>
    %cst_28 = arith.constant dense<0.000000e+00> : vector<8x512xf32>
    %64 = tpu.matmul %42, %0, %cst_28 {dimension_numbers = #tpu.dot_dimension_numbers<[1], [0], [0], [1], [0, 0, 1, 1], [], []>} : vector<8x128xf32>, vector<128x512xf32>, vector<8x512xf32> -> vector<8x512xf32>
    %65 = arith.addf %63, %64 : vector<8x512xf32>
    %66 = vector.broadcast %56 : vector<8x1xf32> to vector<8x512xf32>
    %67 = vector.broadcast %1 : vector<1x512xf32> to vector<8x512xf32>
    %68 = arith.mulf %66, %67 : vector<8x512xf32>
    %69 = arith.addf %65, %68 : vector<8x512xf32>
    %70 = vector.extract_strided_slice %69 {offsets = [0, 0], sizes = [8, 128], strides = [1, 1]} : vector<8x512xf32> to vector<8x128xf32>
    %71 = arith.negf %70 : vector<8x128xf32>
    %72 = math.exp %71 : vector<8x128xf32>
    %cst_29 = arith.constant 1.000000e+00 : f32
    %73 = vector.broadcast %cst_29 : f32 to vector<8x128xf32>
    %74 = arith.addf %73, %72 : vector<8x128xf32>
    %75 = arith.divf %73, %74 : vector<8x128xf32>
    %76 = vector.extract_strided_slice %69 {offsets = [0, 128], sizes = [8, 128], strides = [1, 1]} : vector<8x512xf32> to vector<8x128xf32>
    %77 = arith.negf %76 : vector<8x128xf32>
    %78 = math.exp %77 : vector<8x128xf32>
    %cst_30 = arith.constant 1.000000e+00 : f32
    %79 = vector.broadcast %cst_30 : f32 to vector<8x128xf32>
    %80 = arith.addf %79, %78 : vector<8x128xf32>
    %81 = arith.divf %79, %80 : vector<8x128xf32>
    %82 = vector.extract_strided_slice %69 {offsets = [0, 256], sizes = [8, 128], strides = [1, 1]} : vector<8x512xf32> to vector<8x128xf32>
    %83 = math.tanh %82 : vector<8x128xf32>
    %84 = vector.extract_strided_slice %69 {offsets = [0, 384], sizes = [8, 128], strides = [1, 1]} : vector<8x512xf32> to vector<8x128xf32>
    %85 = arith.negf %84 : vector<8x128xf32>
    %86 = math.exp %85 : vector<8x128xf32>
    %cst_31 = arith.constant 1.000000e+00 : f32
    %87 = vector.broadcast %cst_31 : f32 to vector<8x128xf32>
    %88 = arith.addf %87, %86 : vector<8x128xf32>
    %89 = arith.divf %87, %88 : vector<8x128xf32>
    %90 = arith.mulf %81, %40 : vector<8x128xf32>
    %91 = arith.mulf %75, %83 : vector<8x128xf32>
    %92 = arith.addf %90, %91 : vector<8x128xf32>
    %93 = math.tanh %92 : vector<8x128xf32>
    %94 = arith.mulf %89, %93 : vector<8x128xf32>
    %cst_32 = arith.constant dense<0.000000e+00> : vector<8x128xf32>
    %95 = tpu.matmul %94, %2, %cst_32 {dimension_numbers = #tpu.dot_dimension_numbers<[1], [0], [0], [1], [0, 0, 1, 1], [], []>} : vector<8x128xf32>, vector<128x128xf32>, vector<8x128xf32> -> vector<8x128xf32>
    %96 = vector.broadcast %3 : vector<1x128xf32> to vector<8x128xf32>
    %97 = arith.addf %95, %96 : vector<8x128xf32>
    %cst_33 = arith.constant 0.000000e+00 : f32
    %98 = vector.broadcast %cst_33 : f32 to vector<8x128xf32>
    %99 = arith.maximumf %97, %98 : vector<8x128xf32>
    %100 = vector.broadcast %4 : vector<1x128xf32> to vector<8x128xf32>
    %101 = arith.mulf %99, %100 : vector<8x128xf32>
    %cst_34 = arith.constant dense<0.000000e+00> : vector<8xf32>
    %102 = vector.multi_reduction <add>, %101, %cst_34 [1] : vector<8x128xf32> to vector<8xf32>
    %103 = vector.shape_cast %102 : vector<8xf32> to vector<8x1xf32>
    %104 = vector.broadcast %5 : vector<1x1xf32> to vector<8x1xf32>
    %105 = arith.addf %103, %104 : vector<8x1xf32>
    %cst_35 = arith.constant 0.000000e+00 : f32
    %106 = vector.broadcast %cst_35 : f32 to vector<8x1xf32>
    %107 = arith.maximumf %105, %106 : vector<8x1xf32>
    %108 = arith.addf %56, %107 : vector<8x1xf32>
    %109 = arith.index_cast %c1_i32 : i32 to index
    %c0_36 = arith.constant 0 : index
    %c0_37 = arith.constant 0 : index
    %110 = vector.load %arg9[%109, %c0_36, %c0_37] : memref<8x8x1xf32, #tpu.memory_space<vmem>>, vector<1x8x1xf32>
    %111 = vector.shape_cast %110 : vector<1x8x1xf32> to vector<8x1xf32>
    %112 = vector.shape_cast %108 : vector<8x1xf32> to vector<1x8x1xf32>
    tpu.vector_store %arg9[%109, %c0_36, %c0_37], %112 {strides = array<i32>} : memref<8x8x1xf32, #tpu.memory_space<vmem>>, vector<1x8x1xf32>,
    %c2_i32 = arith.constant 2 : i32
    %113 = arith.index_cast %c2_i32 : i32 to index
    %c0_38 = arith.constant 0 : index
    %c0_39 = arith.constant 0 : index
    %114 = vector.load %arg1[%113, %c0_38, %c0_39] : memref<8x8x512xf32, #tpu.memory_space<vmem>>, vector<1x8x512xf32>
    %115 = vector.shape_cast %114 : vector<1x8x512xf32> to vector<8x512xf32>
    %cst_40 = arith.constant dense<0.000000e+00> : vector<8x512xf32>
    %116 = tpu.matmul %94, %0, %cst_40 {dimension_numbers = #tpu.dot_dimension_numbers<[1], [0], [0], [1], [0, 0, 1, 1], [], []>} : vector<8x128xf32>, vector<128x512xf32>, vector<8x512xf32> -> vector<8x512xf32>
    %117 = arith.addf %115, %116 : vector<8x512xf32>
    %118 = vector.broadcast %108 : vector<8x1xf32> to vector<8x512xf32>
    %119 = vector.broadcast %1 : vector<1x512xf32> to vector<8x512xf32>
    %120 = arith.mulf %118, %119 : vector<8x512xf32>
    %121 = arith.addf %117, %120 : vector<8x512xf32>
    %122 = vector.extract_strided_slice %121 {offsets = [0, 0], sizes = [8, 128], strides = [1, 1]} : vector<8x512xf32> to vector<8x128xf32>
    %123 = arith.negf %122 : vector<8x128xf32>
    %124 = math.exp %123 : vector<8x128xf32>
    %cst_41 = arith.constant 1.000000e+00 : f32
    %125 = vector.broadcast %cst_41 : f32 to vector<8x128xf32>
    %126 = arith.addf %125, %124 : vector<8x128xf32>
    %127 = arith.divf %125, %126 : vector<8x128xf32>
    %128 = vector.extract_strided_slice %121 {offsets = [0, 128], sizes = [8, 128], strides = [1, 1]} : vector<8x512xf32> to vector<8x128xf32>
    %129 = arith.negf %128 : vector<8x128xf32>
    %130 = math.exp %129 : vector<8x128xf32>
    %cst_42 = arith.constant 1.000000e+00 : f32
    %131 = vector.broadcast %cst_42 : f32 to vector<8x128xf32>
    %132 = arith.addf %131, %130 : vector<8x128xf32>
    %133 = arith.divf %131, %132 : vector<8x128xf32>
    %134 = vector.extract_strided_slice %121 {offsets = [0, 256], sizes = [8, 128], strides = [1, 1]} : vector<8x512xf32> to vector<8x128xf32>
    %135 = math.tanh %134 : vector<8x128xf32>
    %136 = vector.extract_strided_slice %121 {offsets = [0, 384], sizes = [8, 128], strides = [1, 1]} : vector<8x512xf32> to vector<8x128xf32>
    %137 = arith.negf %136 : vector<8x128xf32>
    %138 = math.exp %137 : vector<8x128xf32>
    %cst_43 = arith.constant 1.000000e+00 : f32
    %139 = vector.broadcast %cst_43 : f32 to vector<8x128xf32>
    %140 = arith.addf %139, %138 : vector<8x128xf32>
    %141 = arith.divf %139, %140 : vector<8x128xf32>
    %142 = arith.mulf %133, %92 : vector<8x128xf32>
    %143 = arith.mulf %127, %135 : vector<8x128xf32>
    %144 = arith.addf %142, %143 : vector<8x128xf32>
    %145 = math.tanh %144 : vector<8x128xf32>
    %146 = arith.mulf %141, %145 : vector<8x128xf32>
    %cst_44 = arith.constant dense<0.000000e+00> : vector<8x128xf32>
    %147 = tpu.matmul %146, %2, %cst_44 {dimension_numbers = #tpu.dot_dimension_numbers<[1], [0], [0], [1], [0, 0, 1, 1], [], []>} : vector<8x128xf32>, vector<128x128xf32>, vector<8x128xf32> -> vector<8x128xf32>
    %148 = vector.broadcast %3 : vector<1x128xf32> to vector<8x128xf32>
    %149 = arith.addf %147, %148 : vector<8x128xf32>
    %cst_45 = arith.constant 0.000000e+00 : f32
    %150 = vector.broadcast %cst_45 : f32 to vector<8x128xf32>
    %151 = arith.maximumf %149, %150 : vector<8x128xf32>
    %152 = vector.broadcast %4 : vector<1x128xf32> to vector<8x128xf32>
    %153 = arith.mulf %151, %152 : vector<8x128xf32>
    %cst_46 = arith.constant dense<0.000000e+00> : vector<8xf32>
    %154 = vector.multi_reduction <add>, %153, %cst_46 [1] : vector<8x128xf32> to vector<8xf32>
    %155 = vector.shape_cast %154 : vector<8xf32> to vector<8x1xf32>
    %156 = vector.broadcast %5 : vector<1x1xf32> to vector<8x1xf32>
    %157 = arith.addf %155, %156 : vector<8x1xf32>
    %cst_47 = arith.constant 0.000000e+00 : f32
    %158 = vector.broadcast %cst_47 : f32 to vector<8x1xf32>
    %159 = arith.maximumf %157, %158 : vector<8x1xf32>
    %160 = arith.addf %108, %159 : vector<8x1xf32>
    %161 = arith.index_cast %c2_i32 : i32 to index
    %c0_48 = arith.constant 0 : index
    %c0_49 = arith.constant 0 : index
    %162 = vector.load %arg9[%161, %c0_48, %c0_49] : memref<8x8x1xf32, #tpu.memory_space<vmem>>, vector<1x8x1xf32>
    %163 = vector.shape_cast %162 : vector<1x8x1xf32> to vector<8x1xf32>
    %164 = vector.shape_cast %160 : vector<8x1xf32> to vector<1x8x1xf32>
    tpu.vector_store %arg9[%161, %c0_48, %c0_49], %164 {strides = array<i32>} : memref<8x8x1xf32, #tpu.memory_space<vmem>>, vector<1x8x1xf32>,
    %c3_i32 = arith.constant 3 : i32
    %165 = arith.index_cast %c3_i32 : i32 to index
    %c0_50 = arith.constant 0 : index
    %c0_51 = arith.constant 0 : index
    %166 = vector.load %arg1[%165, %c0_50, %c0_51] : memref<8x8x512xf32, #tpu.memory_space<vmem>>, vector<1x8x512xf32>
    %167 = vector.shape_cast %166 : vector<1x8x512xf32> to vector<8x512xf32>
    %cst_52 = arith.constant dense<0.000000e+00> : vector<8x512xf32>
    %168 = tpu.matmul %146, %0, %cst_52 {dimension_numbers = #tpu.dot_dimension_numbers<[1], [0], [0], [1], [0, 0, 1, 1], [], []>} : vector<8x128xf32>, vector<128x512xf32>, vector<8x512xf32> -> vector<8x512xf32>
    %169 = arith.addf %167, %168 : vector<8x512xf32>
    %170 = vector.broadcast %160 : vector<8x1xf32> to vector<8x512xf32>
    %171 = vector.broadcast %1 : vector<1x512xf32> to vector<8x512xf32>
    %172 = arith.mulf %170, %171 : vector<8x512xf32>
    %173 = arith.addf %169, %172 : vector<8x512xf32>
    %174 = vector.extract_strided_slice %173 {offsets = [0, 0], sizes = [8, 128], strides = [1, 1]} : vector<8x512xf32> to vector<8x128xf32>
    %175 = arith.negf %174 : vector<8x128xf32>
    %176 = math.exp %175 : vector<8x128xf32>
    %cst_53 = arith.constant 1.000000e+00 : f32
    %177 = vector.broadcast %cst_53 : f32 to vector<8x128xf32>
    %178 = arith.addf %177, %176 : vector<8x128xf32>
    %179 = arith.divf %177, %178 : vector<8x128xf32>
    %180 = vector.extract_strided_slice %173 {offsets = [0, 128], sizes = [8, 128], strides = [1, 1]} : vector<8x512xf32> to vector<8x128xf32>
    %181 = arith.negf %180 : vector<8x128xf32>
    %182 = math.exp %181 : vector<8x128xf32>
    %cst_54 = arith.constant 1.000000e+00 : f32
    %183 = vector.broadcast %cst_54 : f32 to vector<8x128xf32>
    %184 = arith.addf %183, %182 : vector<8x128xf32>
    %185 = arith.divf %183, %184 : vector<8x128xf32>
    %186 = vector.extract_strided_slice %173 {offsets = [0, 256], sizes = [8, 128], strides = [1, 1]} : vector<8x512xf32> to vector<8x128xf32>
    %187 = math.tanh %186 : vector<8x128xf32>
    %188 = vector.extract_strided_slice %173 {offsets = [0, 384], sizes = [8, 128], strides = [1, 1]} : vector<8x512xf32> to vector<8x128xf32>
    %189 = arith.negf %188 : vector<8x128xf32>
    %190 = math.exp %189 : vector<8x128xf32>
    %cst_55 = arith.constant 1.000000e+00 : f32
    %191 = vector.broadcast %cst_55 : f32 to vector<8x128xf32>
    %192 = arith.addf %191, %190 : vector<8x128xf32>
    %193 = arith.divf %191, %192 : vector<8x128xf32>
    %194 = arith.mulf %185, %144 : vector<8x128xf32>
    %195 = arith.mulf %179, %187 : vector<8x128xf32>
    %196 = arith.addf %194, %195 : vector<8x128xf32>
    %197 = math.tanh %196 : vector<8x128xf32>
    %198 = arith.mulf %193, %197 : vector<8x128xf32>
    %cst_56 = arith.constant dense<0.000000e+00> : vector<8x128xf32>
    %199 = tpu.matmul %198, %2, %cst_56 {dimension_numbers = #tpu.dot_dimension_numbers<[1], [0], [0], [1], [0, 0, 1, 1], [], []>} : vector<8x128xf32>, vector<128x128xf32>, vector<8x128xf32> -> vector<8x128xf32>
    %200 = vector.broadcast %3 : vector<1x128xf32> to vector<8x128xf32>
    %201 = arith.addf %199, %200 : vector<8x128xf32>
    %cst_57 = arith.constant 0.000000e+00 : f32
    %202 = vector.broadcast %cst_57 : f32 to vector<8x128xf32>
    %203 = arith.maximumf %201, %202 : vector<8x128xf32>
    %204 = vector.broadcast %4 : vector<1x128xf32> to vector<8x128xf32>
    %205 = arith.mulf %203, %204 : vector<8x128xf32>
    %cst_58 = arith.constant dense<0.000000e+00> : vector<8xf32>
    %206 = vector.multi_reduction <add>, %205, %cst_58 [1] : vector<8x128xf32> to vector<8xf32>
    %207 = vector.shape_cast %206 : vector<8xf32> to vector<8x1xf32>
    %208 = vector.broadcast %5 : vector<1x1xf32> to vector<8x1xf32>
    %209 = arith.addf %207, %208 : vector<8x1xf32>
    %cst_59 = arith.constant 0.000000e+00 : f32
    %210 = vector.broadcast %cst_59 : f32 to vector<8x1xf32>
    %211 = arith.maximumf %209, %210 : vector<8x1xf32>
    %212 = arith.addf %160, %211 : vector<8x1xf32>
    %213 = arith.index_cast %c3_i32 : i32 to index
    %c0_60 = arith.constant 0 : index
    %c0_61 = arith.constant 0 : index
    %214 = vector.load %arg9[%213, %c0_60, %c0_61] : memref<8x8x1xf32, #tpu.memory_space<vmem>>, vector<1x8x1xf32>
    %215 = vector.shape_cast %214 : vector<1x8x1xf32> to vector<8x1xf32>
    %216 = vector.shape_cast %212 : vector<8x1xf32> to vector<1x8x1xf32>
    tpu.vector_store %arg9[%213, %c0_60, %c0_61], %216 {strides = array<i32>} : memref<8x8x1xf32, #tpu.memory_space<vmem>>, vector<1x8x1xf32>,
    %c4_i32 = arith.constant 4 : i32
    %217 = arith.index_cast %c4_i32 : i32 to index
    %c0_62 = arith.constant 0 : index
    %c0_63 = arith.constant 0 : index
    %218 = vector.load %arg1[%217, %c0_62, %c0_63] : memref<8x8x512xf32, #tpu.memory_space<vmem>>, vector<1x8x512xf32>
    %219 = vector.shape_cast %218 : vector<1x8x512xf32> to vector<8x512xf32>
    %cst_64 = arith.constant dense<0.000000e+00> : vector<8x512xf32>
    %220 = tpu.matmul %198, %0, %cst_64 {dimension_numbers = #tpu.dot_dimension_numbers<[1], [0], [0], [1], [0, 0, 1, 1], [], []>} : vector<8x128xf32>, vector<128x512xf32>, vector<8x512xf32> -> vector<8x512xf32>
    %221 = arith.addf %219, %220 : vector<8x512xf32>
    %222 = vector.broadcast %212 : vector<8x1xf32> to vector<8x512xf32>
    %223 = vector.broadcast %1 : vector<1x512xf32> to vector<8x512xf32>
    %224 = arith.mulf %222, %223 : vector<8x512xf32>
    %225 = arith.addf %221, %224 : vector<8x512xf32>
    %226 = vector.extract_strided_slice %225 {offsets = [0, 0], sizes = [8, 128], strides = [1, 1]} : vector<8x512xf32> to vector<8x128xf32>
    %227 = arith.negf %226 : vector<8x128xf32>
    %228 = math.exp %227 : vector<8x128xf32>
    %cst_65 = arith.constant 1.000000e+00 : f32
    %229 = vector.broadcast %cst_65 : f32 to vector<8x128xf32>
    %230 = arith.addf %229, %228 : vector<8x128xf32>
    %231 = arith.divf %229, %230 : vector<8x128xf32>
    %232 = vector.extract_strided_slice %225 {offsets = [0, 128], sizes = [8, 128], strides = [1, 1]} : vector<8x512xf32> to vector<8x128xf32>
    %233 = arith.negf %232 : vector<8x128xf32>
    %234 = math.exp %233 : vector<8x128xf32>
    %cst_66 = arith.constant 1.000000e+00 : f32
    %235 = vector.broadcast %cst_66 : f32 to vector<8x128xf32>
    %236 = arith.addf %235, %234 : vector<8x128xf32>
    %237 = arith.divf %235, %236 : vector<8x128xf32>
    %238 = vector.extract_strided_slice %225 {offsets = [0, 256], sizes = [8, 128], strides = [1, 1]} : vector<8x512xf32> to vector<8x128xf32>
    %239 = math.tanh %238 : vector<8x128xf32>
    %240 = vector.extract_strided_slice %225 {offsets = [0, 384], sizes = [8, 128], strides = [1, 1]} : vector<8x512xf32> to vector<8x128xf32>
    %241 = arith.negf %240 : vector<8x128xf32>
    %242 = math.exp %241 : vector<8x128xf32>
    %cst_67 = arith.constant 1.000000e+00 : f32
    %243 = vector.broadcast %cst_67 : f32 to vector<8x128xf32>
    %244 = arith.addf %243, %242 : vector<8x128xf32>
    %245 = arith.divf %243, %244 : vector<8x128xf32>
    %246 = arith.mulf %237, %196 : vector<8x128xf32>
    %247 = arith.mulf %231, %239 : vector<8x128xf32>
    %248 = arith.addf %246, %247 : vector<8x128xf32>
    %249 = math.tanh %248 : vector<8x128xf32>
    %250 = arith.mulf %245, %249 : vector<8x128xf32>
    %cst_68 = arith.constant dense<0.000000e+00> : vector<8x128xf32>
    %251 = tpu.matmul %250, %2, %cst_68 {dimension_numbers = #tpu.dot_dimension_numbers<[1], [0], [0], [1], [0, 0, 1, 1], [], []>} : vector<8x128xf32>, vector<128x128xf32>, vector<8x128xf32> -> vector<8x128xf32>
    %252 = vector.broadcast %3 : vector<1x128xf32> to vector<8x128xf32>
    %253 = arith.addf %251, %252 : vector<8x128xf32>
    %cst_69 = arith.constant 0.000000e+00 : f32
    %254 = vector.broadcast %cst_69 : f32 to vector<8x128xf32>
    %255 = arith.maximumf %253, %254 : vector<8x128xf32>
    %256 = vector.broadcast %4 : vector<1x128xf32> to vector<8x128xf32>
    %257 = arith.mulf %255, %256 : vector<8x128xf32>
    %cst_70 = arith.constant dense<0.000000e+00> : vector<8xf32>
    %258 = vector.multi_reduction <add>, %257, %cst_70 [1] : vector<8x128xf32> to vector<8xf32>
    %259 = vector.shape_cast %258 : vector<8xf32> to vector<8x1xf32>
    %260 = vector.broadcast %5 : vector<1x1xf32> to vector<8x1xf32>
    %261 = arith.addf %259, %260 : vector<8x1xf32>
    %cst_71 = arith.constant 0.000000e+00 : f32
    %262 = vector.broadcast %cst_71 : f32 to vector<8x1xf32>
    %263 = arith.maximumf %261, %262 : vector<8x1xf32>
    %264 = arith.addf %212, %263 : vector<8x1xf32>
    %265 = arith.index_cast %c4_i32 : i32 to index
    %c0_72 = arith.constant 0 : index
    %c0_73 = arith.constant 0 : index
    %266 = vector.load %arg9[%265, %c0_72, %c0_73] : memref<8x8x1xf32, #tpu.memory_space<vmem>>, vector<1x8x1xf32>
    %267 = vector.shape_cast %266 : vector<1x8x1xf32> to vector<8x1xf32>
    %268 = vector.shape_cast %264 : vector<8x1xf32> to vector<1x8x1xf32>
    tpu.vector_store %arg9[%265, %c0_72, %c0_73], %268 {strides = array<i32>} : memref<8x8x1xf32, #tpu.memory_space<vmem>>, vector<1x8x1xf32>,
    %c5_i32 = arith.constant 5 : i32
    %269 = arith.index_cast %c5_i32 : i32 to index
    %c0_74 = arith.constant 0 : index
    %c0_75 = arith.constant 0 : index
    %270 = vector.load %arg1[%269, %c0_74, %c0_75] : memref<8x8x512xf32, #tpu.memory_space<vmem>>, vector<1x8x512xf32>
    %271 = vector.shape_cast %270 : vector<1x8x512xf32> to vector<8x512xf32>
    %cst_76 = arith.constant dense<0.000000e+00> : vector<8x512xf32>
    %272 = tpu.matmul %250, %0, %cst_76 {dimension_numbers = #tpu.dot_dimension_numbers<[1], [0], [0], [1], [0, 0, 1, 1], [], []>} : vector<8x128xf32>, vector<128x512xf32>, vector<8x512xf32> -> vector<8x512xf32>
    %273 = arith.addf %271, %272 : vector<8x512xf32>
    %274 = vector.broadcast %264 : vector<8x1xf32> to vector<8x512xf32>
    %275 = vector.broadcast %1 : vector<1x512xf32> to vector<8x512xf32>
    %276 = arith.mulf %274, %275 : vector<8x512xf32>
    %277 = arith.addf %273, %276 : vector<8x512xf32>
    %278 = vector.extract_strided_slice %277 {offsets = [0, 0], sizes = [8, 128], strides = [1, 1]} : vector<8x512xf32> to vector<8x128xf32>
    %279 = arith.negf %278 : vector<8x128xf32>
    %280 = math.exp %279 : vector<8x128xf32>
    %cst_77 = arith.constant 1.000000e+00 : f32
    %281 = vector.broadcast %cst_77 : f32 to vector<8x128xf32>
    %282 = arith.addf %281, %280 : vector<8x128xf32>
    %283 = arith.divf %281, %282 : vector<8x128xf32>
    %284 = vector.extract_strided_slice %277 {offsets = [0, 128], sizes = [8, 128], strides = [1, 1]} : vector<8x512xf32> to vector<8x128xf32>
    %285 = arith.negf %284 : vector<8x128xf32>
    %286 = math.exp %285 : vector<8x128xf32>
    %cst_78 = arith.constant 1.000000e+00 : f32
    %287 = vector.broadcast %cst_78 : f32 to vector<8x128xf32>
    %288 = arith.addf %287, %286 : vector<8x128xf32>
    %289 = arith.divf %287, %288 : vector<8x128xf32>
    %290 = vector.extract_strided_slice %277 {offsets = [0, 256], sizes = [8, 128], strides = [1, 1]} : vector<8x512xf32> to vector<8x128xf32>
    %291 = math.tanh %290 : vector<8x128xf32>
    %292 = vector.extract_strided_slice %277 {offsets = [0, 384], sizes = [8, 128], strides = [1, 1]} : vector<8x512xf32> to vector<8x128xf32>
    %293 = arith.negf %292 : vector<8x128xf32>
    %294 = math.exp %293 : vector<8x128xf32>
    %cst_79 = arith.constant 1.000000e+00 : f32
    %295 = vector.broadcast %cst_79 : f32 to vector<8x128xf32>
    %296 = arith.addf %295, %294 : vector<8x128xf32>
    %297 = arith.divf %295, %296 : vector<8x128xf32>
    %298 = arith.mulf %289, %248 : vector<8x128xf32>
    %299 = arith.mulf %283, %291 : vector<8x128xf32>
    %300 = arith.addf %298, %299 : vector<8x128xf32>
    %301 = math.tanh %300 : vector<8x128xf32>
    %302 = arith.mulf %297, %301 : vector<8x128xf32>
    %cst_80 = arith.constant dense<0.000000e+00> : vector<8x128xf32>
    %303 = tpu.matmul %302, %2, %cst_80 {dimension_numbers = #tpu.dot_dimension_numbers<[1], [0], [0], [1], [0, 0, 1, 1], [], []>} : vector<8x128xf32>, vector<128x128xf32>, vector<8x128xf32> -> vector<8x128xf32>
    %304 = vector.broadcast %3 : vector<1x128xf32> to vector<8x128xf32>
    %305 = arith.addf %303, %304 : vector<8x128xf32>
    %cst_81 = arith.constant 0.000000e+00 : f32
    %306 = vector.broadcast %cst_81 : f32 to vector<8x128xf32>
    %307 = arith.maximumf %305, %306 : vector<8x128xf32>
    %308 = vector.broadcast %4 : vector<1x128xf32> to vector<8x128xf32>
    %309 = arith.mulf %307, %308 : vector<8x128xf32>
    %cst_82 = arith.constant dense<0.000000e+00> : vector<8xf32>
    %310 = vector.multi_reduction <add>, %309, %cst_82 [1] : vector<8x128xf32> to vector<8xf32>
    %311 = vector.shape_cast %310 : vector<8xf32> to vector<8x1xf32>
    %312 = vector.broadcast %5 : vector<1x1xf32> to vector<8x1xf32>
    %313 = arith.addf %311, %312 : vector<8x1xf32>
    %cst_83 = arith.constant 0.000000e+00 : f32
    %314 = vector.broadcast %cst_83 : f32 to vector<8x1xf32>
    %315 = arith.maximumf %313, %314 : vector<8x1xf32>
    %316 = arith.addf %264, %315 : vector<8x1xf32>
    %317 = arith.index_cast %c5_i32 : i32 to index
    %c0_84 = arith.constant 0 : index
    %c0_85 = arith.constant 0 : index
    %318 = vector.load %arg9[%317, %c0_84, %c0_85] : memref<8x8x1xf32, #tpu.memory_space<vmem>>, vector<1x8x1xf32>
    %319 = vector.shape_cast %318 : vector<1x8x1xf32> to vector<8x1xf32>
    %320 = vector.shape_cast %316 : vector<8x1xf32> to vector<1x8x1xf32>
    tpu.vector_store %arg9[%317, %c0_84, %c0_85], %320 {strides = array<i32>} : memref<8x8x1xf32, #tpu.memory_space<vmem>>, vector<1x8x1xf32>,
    %c6_i32 = arith.constant 6 : i32
    %321 = arith.index_cast %c6_i32 : i32 to index
    %c0_86 = arith.constant 0 : index
    %c0_87 = arith.constant 0 : index
    %322 = vector.load %arg1[%321, %c0_86, %c0_87] : memref<8x8x512xf32, #tpu.memory_space<vmem>>, vector<1x8x512xf32>
    %323 = vector.shape_cast %322 : vector<1x8x512xf32> to vector<8x512xf32>
    %cst_88 = arith.constant dense<0.000000e+00> : vector<8x512xf32>
    %324 = tpu.matmul %302, %0, %cst_88 {dimension_numbers = #tpu.dot_dimension_numbers<[1], [0], [0], [1], [0, 0, 1, 1], [], []>} : vector<8x128xf32>, vector<128x512xf32>, vector<8x512xf32> -> vector<8x512xf32>
    %325 = arith.addf %323, %324 : vector<8x512xf32>
    %326 = vector.broadcast %316 : vector<8x1xf32> to vector<8x512xf32>
    %327 = vector.broadcast %1 : vector<1x512xf32> to vector<8x512xf32>
    %328 = arith.mulf %326, %327 : vector<8x512xf32>
    %329 = arith.addf %325, %328 : vector<8x512xf32>
    %330 = vector.extract_strided_slice %329 {offsets = [0, 0], sizes = [8, 128], strides = [1, 1]} : vector<8x512xf32> to vector<8x128xf32>
    %331 = arith.negf %330 : vector<8x128xf32>
    %332 = math.exp %331 : vector<8x128xf32>
    %cst_89 = arith.constant 1.000000e+00 : f32
    %333 = vector.broadcast %cst_89 : f32 to vector<8x128xf32>
    %334 = arith.addf %333, %332 : vector<8x128xf32>
    %335 = arith.divf %333, %334 : vector<8x128xf32>
    %336 = vector.extract_strided_slice %329 {offsets = [0, 128], sizes = [8, 128], strides = [1, 1]} : vector<8x512xf32> to vector<8x128xf32>
    %337 = arith.negf %336 : vector<8x128xf32>
    %338 = math.exp %337 : vector<8x128xf32>
    %cst_90 = arith.constant 1.000000e+00 : f32
    %339 = vector.broadcast %cst_90 : f32 to vector<8x128xf32>
    %340 = arith.addf %339, %338 : vector<8x128xf32>
    %341 = arith.divf %339, %340 : vector<8x128xf32>
    %342 = vector.extract_strided_slice %329 {offsets = [0, 256], sizes = [8, 128], strides = [1, 1]} : vector<8x512xf32> to vector<8x128xf32>
    %343 = math.tanh %342 : vector<8x128xf32>
    %344 = vector.extract_strided_slice %329 {offsets = [0, 384], sizes = [8, 128], strides = [1, 1]} : vector<8x512xf32> to vector<8x128xf32>
    %345 = arith.negf %344 : vector<8x128xf32>
    %346 = math.exp %345 : vector<8x128xf32>
    %cst_91 = arith.constant 1.000000e+00 : f32
    %347 = vector.broadcast %cst_91 : f32 to vector<8x128xf32>
    %348 = arith.addf %347, %346 : vector<8x128xf32>
    %349 = arith.divf %347, %348 : vector<8x128xf32>
    %350 = arith.mulf %341, %300 : vector<8x128xf32>
    %351 = arith.mulf %335, %343 : vector<8x128xf32>
    %352 = arith.addf %350, %351 : vector<8x128xf32>
    %353 = math.tanh %352 : vector<8x128xf32>
    %354 = arith.mulf %349, %353 : vector<8x128xf32>
    %cst_92 = arith.constant dense<0.000000e+00> : vector<8x128xf32>
    %355 = tpu.matmul %354, %2, %cst_92 {dimension_numbers = #tpu.dot_dimension_numbers<[1], [0], [0], [1], [0, 0, 1, 1], [], []>} : vector<8x128xf32>, vector<128x128xf32>, vector<8x128xf32> -> vector<8x128xf32>
    %356 = vector.broadcast %3 : vector<1x128xf32> to vector<8x128xf32>
    %357 = arith.addf %355, %356 : vector<8x128xf32>
    %cst_93 = arith.constant 0.000000e+00 : f32
    %358 = vector.broadcast %cst_93 : f32 to vector<8x128xf32>
    %359 = arith.maximumf %357, %358 : vector<8x128xf32>
    %360 = vector.broadcast %4 : vector<1x128xf32> to vector<8x128xf32>
    %361 = arith.mulf %359, %360 : vector<8x128xf32>
    %cst_94 = arith.constant dense<0.000000e+00> : vector<8xf32>
    %362 = vector.multi_reduction <add>, %361, %cst_94 [1] : vector<8x128xf32> to vector<8xf32>
    %363 = vector.shape_cast %362 : vector<8xf32> to vector<8x1xf32>
    %364 = vector.broadcast %5 : vector<1x1xf32> to vector<8x1xf32>
    %365 = arith.addf %363, %364 : vector<8x1xf32>
    %cst_95 = arith.constant 0.000000e+00 : f32
    %366 = vector.broadcast %cst_95 : f32 to vector<8x1xf32>
    %367 = arith.maximumf %365, %366 : vector<8x1xf32>
    %368 = arith.addf %316, %367 : vector<8x1xf32>
    %369 = arith.index_cast %c6_i32 : i32 to index
    %c0_96 = arith.constant 0 : index
    %c0_97 = arith.constant 0 : index
    %370 = vector.load %arg9[%369, %c0_96, %c0_97] : memref<8x8x1xf32, #tpu.memory_space<vmem>>, vector<1x8x1xf32>
    %371 = vector.shape_cast %370 : vector<1x8x1xf32> to vector<8x1xf32>
    %372 = vector.shape_cast %368 : vector<8x1xf32> to vector<1x8x1xf32>
    tpu.vector_store %arg9[%369, %c0_96, %c0_97], %372 {strides = array<i32>} : memref<8x8x1xf32, #tpu.memory_space<vmem>>, vector<1x8x1xf32>,
    %c7_i32 = arith.constant 7 : i32
    %373 = arith.index_cast %c7_i32 : i32 to index
    %c0_98 = arith.constant 0 : index
    %c0_99 = arith.constant 0 : index
    %374 = vector.load %arg1[%373, %c0_98, %c0_99] : memref<8x8x512xf32, #tpu.memory_space<vmem>>, vector<1x8x512xf32>
    %375 = vector.shape_cast %374 : vector<1x8x512xf32> to vector<8x512xf32>
    %cst_100 = arith.constant dense<0.000000e+00> : vector<8x512xf32>
    %376 = tpu.matmul %354, %0, %cst_100 {dimension_numbers = #tpu.dot_dimension_numbers<[1], [0], [0], [1], [0, 0, 1, 1], [], []>} : vector<8x128xf32>, vector<128x512xf32>, vector<8x512xf32> -> vector<8x512xf32>
    %377 = arith.addf %375, %376 : vector<8x512xf32>
    %378 = vector.broadcast %368 : vector<8x1xf32> to vector<8x512xf32>
    %379 = vector.broadcast %1 : vector<1x512xf32> to vector<8x512xf32>
    %380 = arith.mulf %378, %379 : vector<8x512xf32>
    %381 = arith.addf %377, %380 : vector<8x512xf32>
    %382 = vector.extract_strided_slice %381 {offsets = [0, 0], sizes = [8, 128], strides = [1, 1]} : vector<8x512xf32> to vector<8x128xf32>
    %383 = arith.negf %382 : vector<8x128xf32>
    %384 = math.exp %383 : vector<8x128xf32>
    %cst_101 = arith.constant 1.000000e+00 : f32
    %385 = vector.broadcast %cst_101 : f32 to vector<8x128xf32>
    %386 = arith.addf %385, %384 : vector<8x128xf32>
    %387 = arith.divf %385, %386 : vector<8x128xf32>
    %388 = vector.extract_strided_slice %381 {offsets = [0, 128], sizes = [8, 128], strides = [1, 1]} : vector<8x512xf32> to vector<8x128xf32>
    %389 = arith.negf %388 : vector<8x128xf32>
    %390 = math.exp %389 : vector<8x128xf32>
    %cst_102 = arith.constant 1.000000e+00 : f32
    %391 = vector.broadcast %cst_102 : f32 to vector<8x128xf32>
    %392 = arith.addf %391, %390 : vector<8x128xf32>
    %393 = arith.divf %391, %392 : vector<8x128xf32>
    %394 = vector.extract_strided_slice %381 {offsets = [0, 256], sizes = [8, 128], strides = [1, 1]} : vector<8x512xf32> to vector<8x128xf32>
    %395 = math.tanh %394 : vector<8x128xf32>
    %396 = vector.extract_strided_slice %381 {offsets = [0, 384], sizes = [8, 128], strides = [1, 1]} : vector<8x512xf32> to vector<8x128xf32>
    %397 = arith.negf %396 : vector<8x128xf32>
    %398 = math.exp %397 : vector<8x128xf32>
    %cst_103 = arith.constant 1.000000e+00 : f32
    %399 = vector.broadcast %cst_103 : f32 to vector<8x128xf32>
    %400 = arith.addf %399, %398 : vector<8x128xf32>
    %401 = arith.divf %399, %400 : vector<8x128xf32>
    %402 = arith.mulf %393, %352 : vector<8x128xf32>
    %403 = arith.mulf %387, %395 : vector<8x128xf32>
    %404 = arith.addf %402, %403 : vector<8x128xf32>
    %405 = math.tanh %404 : vector<8x128xf32>
    %406 = arith.mulf %401, %405 : vector<8x128xf32>
    %cst_104 = arith.constant dense<0.000000e+00> : vector<8x128xf32>
    %407 = tpu.matmul %406, %2, %cst_104 {dimension_numbers = #tpu.dot_dimension_numbers<[1], [0], [0], [1], [0, 0, 1, 1], [], []>} : vector<8x128xf32>, vector<128x128xf32>, vector<8x128xf32> -> vector<8x128xf32>
    %408 = vector.broadcast %3 : vector<1x128xf32> to vector<8x128xf32>
    %409 = arith.addf %407, %408 : vector<8x128xf32>
    %cst_105 = arith.constant 0.000000e+00 : f32
    %410 = vector.broadcast %cst_105 : f32 to vector<8x128xf32>
    %411 = arith.maximumf %409, %410 : vector<8x128xf32>
    %412 = vector.broadcast %4 : vector<1x128xf32> to vector<8x128xf32>
    %413 = arith.mulf %411, %412 : vector<8x128xf32>
    %cst_106 = arith.constant dense<0.000000e+00> : vector<8xf32>
    %414 = vector.multi_reduction <add>, %413, %cst_106 [1] : vector<8x128xf32> to vector<8xf32>
    %415 = vector.shape_cast %414 : vector<8xf32> to vector<8x1xf32>
    %416 = vector.broadcast %5 : vector<1x1xf32> to vector<8x1xf32>
    %417 = arith.addf %415, %416 : vector<8x1xf32>
    %cst_107 = arith.constant 0.000000e+00 : f32
    %418 = vector.broadcast %cst_107 : f32 to vector<8x1xf32>
    %419 = arith.maximumf %417, %418 : vector<8x1xf32>
    %420 = arith.addf %368, %419 : vector<8x1xf32>
    %421 = arith.index_cast %c7_i32 : i32 to index
    %c0_108 = arith.constant 0 : index
    %c0_109 = arith.constant 0 : index
    %422 = vector.load %arg9[%421, %c0_108, %c0_109] : memref<8x8x1xf32, #tpu.memory_space<vmem>>, vector<1x8x1xf32>
    %423 = vector.shape_cast %422 : vector<1x8x1xf32> to vector<8x1xf32>
    %424 = vector.shape_cast %420 : vector<8x1xf32> to vector<1x8x1xf32>
    tpu.vector_store %arg9[%421, %c0_108, %c0_109], %424 {strides = array<i32>} : memref<8x8x1xf32, #tpu.memory_space<vmem>>, vector<1x8x1xf32>,
    %c8_i32 = arith.constant 8 : i32
    return
  }
  func.func @transform_0(%arg0: i32) -> (i32, i32, i32) {
    %c0_i32 = arith.constant 0 : i32
    %c0_i32_0 = arith.constant 0 : i32
    %c0_i32_1 = arith.constant 0 : i32
    %c0_i32_2 = arith.constant 0 : i32
    return %c0_i32, %c0_i32_0, %c0_i32_1 : i32, i32, i32
  }
  func.func @transform_1(%arg0: i32) -> (i32, i32) {
    %c0_i32 = arith.constant 0 : i32
    %c0_i32_0 = arith.constant 0 : i32
    %c0_i32_1 = arith.constant 0 : i32
    return %c0_i32, %c0_i32_0 : i32, i32
  }
  func.func @transform_2(%arg0: i32) -> (i32, i32) {
    %c0_i32 = arith.constant 0 : i32
    %c0_i32_0 = arith.constant 0 : i32
    %c0_i32_1 = arith.constant 0 : i32
    return %c0_i32, %c0_i32_0 : i32, i32
  }
  func.func @transform_3(%arg0: i32) -> (i32, i32) {
    %c0_i32 = arith.constant 0 : i32
    %c0_i32_0 = arith.constant 0 : i32
    %c0_i32_1 = arith.constant 0 : i32
    return %c0_i32, %c0_i32_0 : i32, i32
  }
  func.func @transform_4(%arg0: i32) -> (i32, i32) {
    %c0_i32 = arith.constant 0 : i32
    %c0_i32_0 = arith.constant 0 : i32
    %c0_i32_1 = arith.constant 0 : i32
    return %c0_i32, %c0_i32_0 : i32, i32
  }
  func.func @transform_5(%arg0: i32) -> (i32, i32) {
    %c0_i32 = arith.constant 0 : i32
    %c0_i32_0 = arith.constant 0 : i32
    %c0_i32_1 = arith.constant 0 : i32
    return %c0_i32, %c0_i32_0 : i32, i32
  }
  func.func @transform_6(%arg0: i32) -> (i32, i32) {
    %c0_i32 = arith.constant 0 : i32
    %c0_i32_0 = arith.constant 0 : i32
    %c0_i32_1 = arith.constant 0 : i32
    return %c0_i32, %c0_i32_0 : i32, i32
  }
  func.func @transform_7(%arg0: i32) -> (i32, i32) {
    %c0_i32 = arith.constant 0 : i32
    %c0_i32_0 = arith.constant 0 : i32
    %c0_i32_1 = arith.constant 0 : i32
    return %c0_i32, %c0_i32_0 : i32, i32
  }
  func.func @transform_8(%arg0: i32) -> (i32, i32, i32) {
    %c0_i32 = arith.constant 0 : i32
    %c0_i32_0 = arith.constant 0 : i32
    %c0_i32_1 = arith.constant 0 : i32
    %c0_i32_2 = arith.constant 0 : i32
    return %c0_i32, %c0_i32_0, %c0_i32_1 : i32, i32, i32
  }
}

</mosaic_0001>

<bundles_post_ra>
// kernel: monotonic_density_regressor_v2.1
= control target key start
LH: loop header
LB: loop body
LE: loop exit
PB: predicated region body
PF: predicated region fallthrough
CT: control target
= control target key end

     0   :  { %v4698_v3 = vmov 0.0   ;;  %v3614_v8 = vmov 0   ;;  %vm3616_vm0 = vmmov 0   ;;  %vm419_vm1 = vcmask 7168   ;;  %s4687_s2 = inlined_call_operand.vmem [shape: f32[128,512], index: 2, kind: input, shape index: {}]   ;;  %s4688_s1 = inlined_call_operand.vmem [shape: f32[8,1], index: 1, kind: input, shape index: {}]   ;;  %s4689_s4 = inlined_call_operand.vmem [shape: f32[128,128], index: 4, kind: input, shape index: {}]   ;;  %s4690_s3 = inlined_call_operand.vmem [shape: f32[1,512], index: 3, kind: input, shape index: {}]   ;;  %s4691_s0 = inlined_call_operand.vmem [shape: f32[8,8,512], index: 0, kind: input, shape index: {}]   ;;  %s4692_s7 = inlined_call_operand.<no memory space> [shape: f32[1,1], index: 7, kind: input, shape index: {}]   ;;  %s4693_s5 = inlined_call_operand.vmem [shape: f32[1,128], index: 5, kind: input, shape index: {}]   ;;  %s4694_s6 = inlined_call_operand.vmem [shape: f32[1,128], index: 6, kind: input, shape index: {}]   ;;  %s4695_s8 = inlined_call_operand.vmem [shape: f32[8,8,1], index: 8, kind: output, shape index: {}]  }
   0x1   :  { %v32_v0 = vld [vmem:[%s4687_s2 + $0x8] sm:$0xff]  ;;  %v34_v2 = vld [vmem:[%s4687_s2 + $0x18] sm:$0xff]  ;;  %184 = vmatprep.mubr.f32.mxu0 %v4698_v3  ;;  %255 = vmatprep.mubr.f32.mxu1 %v4698_v3  ;;  %v31_v6 = vld [vmem:[%s4687_s2] sm:$0xff] }
   0x2   :  { %v36_v1 = vld [vmem:[%s4687_s2 + $0x28] sm:$0xff]  ;;  %v38_v5 = vld [vmem:[%s4687_s2 + $0x38] sm:$0xff]  ;;  %v35_v7 = vld [vmem:[%s4687_s2 + $0x20] sm:$0xff]  ;;  %3480 = vset.pattern.permute.xlu0 %v3614_v8  ;;  %3481 = vset.pattern.permute.xlu1 %v3614_v8 }
   0x3   :  { %v3673_v4 = vpack.c.bf16 %v36_v1, %v32_v0  ;;  %v3684_v9 = vpack.c.bf16 %v38_v5, %v34_v2  ;;  %v3686_v10 = vpack.c.bf16 %v35_v7, %v31_v6  ;;  %v33_v11 = vld [vmem:[%s4687_s2 + $0x10] sm:$0xff]  ;;  %v40_v13 = vld [vmem:[%s4687_s2 + $0x48] sm:$0xff]  ;;  %v42_v16 = vld [vmem:[%s4687_s2 + $0x58] sm:$0xff] }
   0x4   :  { %v37_v12 = vld [vmem:[%s4687_s2 + $0x30] sm:$0xff]  ;;  %v44_v15 = vld [vmem:[%s4687_s2 + $0x68] sm:$0xff]  ;;  %v46_v17 = vld [vmem:[%s4687_s2 + $0x78] sm:$0xff] }
   0x5   :  { %2773 = vmatprep.subr.bf16.mxu0 %v3673_v4  ;;  %v3698_v14 = vpack.c.bf16 %v37_v12, %v33_v11  ;;  %2805 = vmatprep.subr.bf16.mxu1 %v3684_v9  ;;  %v3711_v18 = vpack.c.bf16 %v44_v15, %v40_v13  ;;  %v3713_v19 = vpack.c.bf16 %v46_v17, %v42_v16  ;;  %v39_v20 = vld [vmem:[%s4687_s2 + $0x40] sm:$0xff]  ;;  %v41_v22 = vld [vmem:[%s4687_s2 + $0x50] sm:$0xff]  ;;  %v48_v25 = vld [vmem:[%s4687_s2 + $0x88] sm:$0xff] }
   0x6   :  { %2775 = vmatpush1.bf16.msra.mxu0 %v3686_v10  ;;  %v43_v21 = vld [vmem:[%s4687_s2 + $0x60] sm:$0xff]  ;;  %v45_v24 = vld [vmem:[%s4687_s2 + $0x70] sm:$0xff]  ;;  %v52_v26 = vld [vmem:[%s4687_s2 + $0xa8] sm:$0xff] }
   0x7   :  { %2807 = vmatpush1.bf16.msra.mxu1 %v3698_v14  ;;  %v3725_v23 = vpack.c.bf16 %v43_v21, %v39_v20  ;;  %2777 = vmatprep.subr.bf16.mxu0 %v3711_v18  ;;  %v3738_v27 = vpack.c.bf16 %v45_v24, %v41_v22  ;;  %v3740_v28 = vpack.c.bf16 %v52_v26, %v48_v25  ;;  %v50_v29 = vld [vmem:[%s4687_s2 + $0x98] sm:$0xff]  ;;  %v47_v31 = vld [vmem:[%s4687_s2 + $0x80] sm:$0xff]  ;;  %v49_v34 = vld [vmem:[%s4687_s2 + $0x90] sm:$0xff] }
   0x8   :  { %2809 = vmatprep.subr.bf16.mxu1 %v3713_v19  ;;  %v54_v30 = vld [vmem:[%s4687_s2 + $0xb8] sm:$0xff]  ;;  %v51_v33 = vld [vmem:[%s4687_s2 + $0xa0] sm:$0xff]  ;;  %v53_v35 = vld [vmem:[%s4687_s2 + $0xb0] sm:$0xff] }
   0x9   :  { %v3751_v32 = vpack.c.bf16 %v54_v30, %v50_v29  ;;  %v3763_v36 = vpack.c.bf16 %v51_v33, %v47_v31  ;;  %v56_v37 = vld [vmem:[%s4687_s2 + $0xc8] sm:$0xff]  ;;  %v58_v39 = vld [vmem:[%s4687_s2 + $0xd8] sm:$0xff]  ;;  %v3776_v40 = vpack.c.bf16 %v53_v35, %v49_v34  ;;  %v55_v43 = vld [vmem:[%s4687_s2 + $0xc0] sm:$0xff] }
   0xa   :  { %2779 = vmatpush1.bf16.msra.mxu0 %v3725_v23  ;;  %v60_v38 = vld [vmem:[%s4687_s2 + $0xe8] sm:$0xff]  ;;  %v62_v42 = vld [vmem:[%s4687_s2 + $0xf8] sm:$0xff]  ;;  %v59_v44 = vld [vmem:[%s4687_s2 + $0xe0] sm:$0xff] }
   0xb   :  { %2811 = vmatpush1.bf16.msra.mxu1 %v3738_v27  ;;  %2781 = vmatprep.subr.bf16.mxu0 %v3740_v28  ;;  %v3778_v41 = vpack.c.bf16 %v60_v38, %v56_v37  ;;  %v3790_v45 = vpack.c.bf16 %v62_v42, %v58_v39  ;;  %v57_v46 = vld [vmem:[%s4687_s2 + $0xd0] sm:$0xff]  ;;  %v64_v48 = vld [vmem:[%s4687_s2 + $0x108] sm:$0xff]  ;;  %v66_v50 = vld [vmem:[%s4687_s2 + $0x118] sm:$0xff]  ;;  %v3811_v52 = vpack.c.bf16 %v59_v44, %v55_v43 }
   0xc   :  { %2813 = vmatprep.subr.bf16.mxu1 %v3751_v32  ;;  %v61_v47 = vld [vmem:[%s4687_s2 + $0xf0] sm:$0xff]  ;;  %v68_v49 = vld [vmem:[%s4687_s2 + $0x128] sm:$0xff]  ;;  %v70_v51 = vld [vmem:[%s4687_s2 + $0x138] sm:$0xff] }
   0xd   :  { %v3815_v53 = vpack.c.bf16 %v61_v47, %v57_v46  ;;  %v3817_v54 = vpack.c.bf16 %v68_v49, %v64_v48  ;;  %v63_v55 = vld [vmem:[%s4687_s2 + $0x100] sm:$0xff]  ;;  %v65_v57 = vld [vmem:[%s4687_s2 + $0x110] sm:$0xff]  ;;  %v3829_v58 = vpack.c.bf16 %v70_v51, %v66_v50  ;;  %v72_v60 = vld [vmem:[%s4687_s2 + $0x148] sm:$0xff] }
   0xe   :  { %2783 = vmatpush1.bf16.msra.mxu0 %v3763_v36  ;;  %v67_v56 = vld [vmem:[%s4687_s2 + $0x120] sm:$0xff]  ;;  %v69_v59 = vld [vmem:[%s4687_s2 + $0x130] sm:$0xff]  ;;  %v76_v61 = vld [vmem:[%s4687_s2 + $0x168] sm:$0xff] }
   0xf   :  { %2815 = vmatpush1.bf16.msra.mxu1 %v3776_v40  ;;  %2785 = vmatprep.subr.bf16.mxu0 %v3778_v41  ;;  %v74_v62 = vld [vmem:[%s4687_s2 + $0x158] sm:$0xff]  ;;  %v3847_v0 = vpack.c.bf16 %v67_v56, %v63_v55  ;;  %v3851_v1 = vpack.c.bf16 %v69_v59, %v65_v57  ;;  %v3853_v2 = vpack.c.bf16 %v76_v61, %v72_v60  ;;  %v71_v5 = vld [vmem:[%s4687_s2 + $0x140] sm:$0xff]  ;;  %v73_v7 = vld [vmem:[%s4687_s2 + $0x150] sm:$0xff]  ;;  %v4696_v56 = vmov 0.0|0.0  }
  0x10   :  { %2817 = vmatprep.subr.bf16.mxu1 %v3790_v45  ;;  %v78_v63 = vld [vmem:[%s4687_s2 + $0x178] sm:$0xff]  ;;  %v75_v6 = vld [vmem:[%s4687_s2 + $0x160] sm:$0xff]  ;;  %v77_v11 = vld [vmem:[%s4687_s2 + $0x170] sm:$0xff] }
  0x11   :  { %v3865_v8 = vpack.c.bf16 %v78_v63, %v74_v62  ;;  %v80_v12 = vld [vmem:[%s4687_s2 + $0x188] sm:$0xff]  ;;  %v82_v15 = vld [vmem:[%s4687_s2 + $0x198] sm:$0xff]  ;;  %v3883_v17 = vpack.c.bf16 %v75_v6, %v71_v5  ;;  %v79_v20 = vld [vmem:[%s4687_s2 + $0x180] sm:$0xff]  ;;  %v3890_v21 = vpack.c.bf16 %v77_v11, %v73_v7 }
  0x12   :  { %2787 = vmatpush1.bf16.msra.mxu0 %v3811_v52  ;;  %v84_v13 = vld [vmem:[%s4687_s2 + $0x1a8] sm:$0xff]  ;;  %v86_v16 = vld [vmem:[%s4687_s2 + $0x1b8] sm:$0xff]  ;;  %v83_v24 = vld [vmem:[%s4687_s2 + $0x1a0] sm:$0xff] }
  0x13   :  { %2819 = vmatpush1.bf16.msra.mxu1 %v3815_v53  ;;  %2789 = vmatprep.subr.bf16.mxu0 %v3817_v54  ;;  %v3892_v22 = vpack.c.bf16 %v84_v13, %v80_v12  ;;  %v81_v25 = vld [vmem:[%s4687_s2 + $0x190] sm:$0xff]  ;;  %v3903_v26 = vld [vmem:[%s4688_s1] sm:$0xff]  ;;  %v3906_v29 = vpack.c.bf16 %v86_v16, %v82_v15  ;;  %v88_v31 = vld [vmem:[%s4687_s2 + $0x1c8] sm:$0xff]  ;;  %v3925_v37 = vpack.c.bf16 %v83_v24, %v79_v20 }
  0x14   :  { %2821 = vmatprep.subr.bf16.mxu1 %v3829_v58  ;;  %4720 = vst [vmem:[#allocation3_spill] sm:$0xff] %v3903_v26  ;;  %v85_v30 = vld [vmem:[%s4687_s2 + $0x1b0] sm:$0xff]  ;;  %v92_v33 = vld [vmem:[%s4687_s2 + $0x1e8] sm:$0xff]  ;;  %268 = vperm.xlu0 %3480, %v3903_v26   ;;  %v90_v34 = vld [vmem:[%s4687_s2 + $0x1d8] sm:$0xff] }
  0x15   :  { %v94_v35 = vld [vmem:[%s4687_s2 + $0x1f8] sm:$0xff]  ;;  %v3929_v38 = vpack.c.bf16 %v85_v30, %v81_v25  ;;  %v3931_v39 = vpack.c.bf16 %v92_v33, %v88_v31  ;;  %v87_v42 = vld [vmem:[%s4687_s2 + $0x1c0] sm:$0xff]  ;;  %v89_v46 = vld [vmem:[%s4687_s2 + $0x1d0] sm:$0xff] }
  0x16   :  { %2791 = vmatpush1.bf16.msra.mxu0 %v3847_v0  ;;  %v91_v43 = vld [vmem:[%s4687_s2 + $0x1e0] sm:$0xff]  ;;  %v3940_v44 = vpack.c.bf16 %v94_v35, %v90_v34  ;;  %v93_v47 = vld [vmem:[%s4687_s2 + $0x1f0] sm:$0xff]  ;;  %v97_v51 = vld [vmem:[%s4689_s4 + $0x8] sm:$0xff]  ;;  %v272_v35 = vlaneseq }
  0x17   :  { %2823 = vmatpush1.bf16.msra.mxu1 %v3851_v1  ;;  %2793 = vmatprep.subr.bf16.mxu0 %v3853_v2  ;;  %v3949_v48 = vpack.c.bf16 %v91_v43, %v87_v42  ;;  %v3953_v49 = vpack.c.bf16 %v93_v47, %v89_v46  ;;  %v96_v50 = vld [vmem:[%s4689_s4] sm:$0xff]  ;;  %v98_v57 = vld [vmem:[%s4689_s4 + $0x10] sm:$0xff]  ;;  %v99_v59 = vld [vmem:[%s4689_s4 + $0x18] sm:$0xff] }
  0x18   :  { %2825 = vmatprep.subr.bf16.mxu1 %v3865_v8  ;;  %v3983_v55 = vpack.c.bf16 %v97_v51, %v96_v50  ;;  %v3995_v60 = vpack.c.bf16 %v99_v59, %v98_v57  ;;  %v100_v61 = vld [vmem:[%s4689_s4 + $0x20] sm:$0xff]  ;;  %v101_v62 = vld [vmem:[%s4689_s4 + $0x28] sm:$0xff]  ;;  %v102_v5 = vld [vmem:[%s4689_s4 + $0x30] sm:$0xff]  ;;  %v273_v42 = vshrl.u32 %v272_v35, 7 }
  0x19   :  { %4721 = vst [vmem:[#allocation4_spill] sm:$0xff] %v3949_v48  ;;  %v4005_v63 = vpack.c.bf16 %v101_v62, %v100_v61  ;;  %v103_v6 = vld [vmem:[%s4689_s4 + $0x38] sm:$0xff]  ;;  %v104_v11 = vld [vmem:[%s4689_s4 + $0x40] sm:$0xff]  ;;  %v105_v12 = vld [vmem:[%s4689_s4 + $0x48] sm:$0xff] }
  0x1a   :  { %2795 = vmatpush1.bf16.msra.mxu0 %v3883_v17  ;;  %v4015_v7 = vpack.c.bf16 %v103_v6, %v102_v5  ;;  %v4025_v13 = vpack.c.bf16 %v105_v12, %v104_v11  ;;  %v106_v15 = vld [vmem:[%s4689_s4 + $0x50] sm:$0xff]  ;;  %v107_v16 = vld [vmem:[%s4689_s4 + $0x58] sm:$0xff]  ;;  %v108_v24 = vld [vmem:[%s4689_s4 + $0x60] sm:$0xff]  ;;  %v274_v43 = vsub.s32 0, %v273_v42  ;;  %v278_v47 = vsub.s32 1, %v273_v42 }
  0x1b   :  { %2827 = vmatpush1.bf16.msra.mxu1 %v3890_v21  ;;  %2797 = vmatprep.subr.bf16.mxu0 %v3892_v22  ;;  %v4035_v20 = vpack.c.bf16 %v107_v16, %v106_v15  ;;  %v109_v25 = vld [vmem:[%s4689_s4 + $0x68] sm:$0xff]  ;;  %v110_v31 = vld [vmem:[%s4689_s4 + $0x70] sm:$0xff]  ;;  %v111_v33 = vld [vmem:[%s4689_s4 + $0x78] sm:$0xff]  ;;  %v286_v61 = vsub.s32 3, %v273_v42 }
  0x1c   :  { %2829 = vmatprep.subr.bf16.mxu1 %v3906_v29  ;;  %v4046_v30 = vpack.c.bf16 %v109_v25, %v108_v24  ;;  %v4056_v34 = vpack.c.bf16 %v111_v33, %v110_v31  ;;  %v95_v46 = vld [vmem:[%s4690_s3] sm:$0xf]  ;;  %v117_v5 = vld [vmem:[%s4691_s0 + $0x8] sm:$0xff]  ;;  %v282_v33 = vsub.s32 2, %v273_v42 }
  0x1d   :  { %v4064_v50 = vrot.slane %v95_v46, %v274_v43  ;;  %v4066_v57 = vrot.slane %v95_v46, %v278_v47  ;;  %v116_v59 = vld [vmem:[%s4691_s0] sm:$0xff]  ;;  %v4076_v31 = vrot.slane %v95_v46, %v286_v61  ;;  %v119_v43 = vld [vmem:[%s4691_s0 + $0x18] sm:$0xff] }
  0x1e   :  { %2799 = vmatpush1.bf16.msra.mxu0 %v3925_v37 }
  0x1f   :  { %2831 = vmatpush1.bf16.msra.mxu1 %v3929_v38  ;;  %2801 = vmatprep.subr.bf16.mxu0 %v3931_v39  ;;  %4722 = vst [vmem:[#allocation5_spill] sm:$0xff] %v4064_v50  ;;  %4723 = vst [vmem:[#allocation6_spill] sm:$0xff] %v4066_v57 }
  0x20   :  { %2833 = vmatprep.subr.bf16.mxu1 %v3940_v44  ;;  %4724 = vst [vmem:[#allocation7_spill] sm:$0xff] %v4076_v31 }
  0x22   :  { %2803 = vmatpush1.bf16.msra.mxu0 %v3949_v48 }
  0x23   :  { %2835 = vmatpush1.bf16.msra.mxu1 %v3953_v49  ;;  %2836 = vmatprep.subr.bf16.mxu0 %v4696_v56 }
  0x24   :  { %2861 = vmatprep.subr.bf16.mxu1 %v3673_v4 }
  0x25   :  { %185 = vmatmul.mubr.f32.vlgmr.msra.gmra.mrb[0].mxu0 %v4698_v3 }
  0x26   :  { %256 = vmatmul.mubr.f32.vlgmr.msra.gmra.mrb[0].mxu1 %v4698_v3  ;;  %2838 = vmatpush3.bf16.msra.mxu0 %v3983_v55 }
  0x27   :  { %2863 = vmatpush1.bf16.msra.mxu1 %v3686_v10  ;;  %490 = vmatprep.mubr.f32.mxu1 %v4698_v3 }
  0x28   :  { %2865 = vmatprep.subr.bf16.mxu1 %v3711_v18  ;;  %2839 = vmatprep.subr.bf16.mxu0 %v4696_v56 }
  0x29   :  { %2524 = vmatprep.mubr.msk.f32.mxu0 %vm3616_vm0, %v4698_v3 }
  0x2a   :  { %2841 = vmatpush3.bf16.msra.mxu0 %v3995_v60 }
  0x2b   :  { %2867 = vmatpush1.bf16.msra.mxu1 %v3725_v23  ;;  %2842 = vmatprep.subr.bf16.mxu0 %v4696_v56 }
  0x2c   :  { %2869 = vmatprep.subr.bf16.mxu1 %v3740_v28 }
  0x2e   :  { %2844 = vmatpush3.bf16.msra.mxu0 %v4005_v63 }
  0x2f   :  { %2871 = vmatpush1.bf16.msra.mxu1 %v3763_v36  ;;  %2845 = vmatprep.subr.bf16.mxu0 %v4696_v56 }
  0x30   :  { %2873 = vmatprep.subr.bf16.mxu1 %v3778_v41 }
  0x32   :  { %2847 = vmatpush3.bf16.msra.mxu0 %v4015_v7 }
  0x33   :  { %2875 = vmatpush1.bf16.msra.mxu1 %v3811_v52  ;;  %2848 = vmatprep.subr.bf16.mxu0 %v4696_v56 }
  0x34   :  { %2877 = vmatprep.subr.bf16.mxu1 %v3817_v54 }
  0x36   :  { %2850 = vmatpush3.bf16.msra.mxu0 %v4025_v13 }
  0x37   :  { %2879 = vmatpush1.bf16.msra.mxu1 %v3847_v0  ;;  %2851 = vmatprep.subr.bf16.mxu0 %v4696_v56 }
  0x38   :  { %2881 = vmatprep.subr.bf16.mxu1 %v3853_v2 }
  0x3a   :  { %2853 = vmatpush3.bf16.msra.mxu0 %v4035_v20 }
  0x3b   :  { %2883 = vmatpush1.bf16.msra.mxu1 %v3883_v17  ;;  %2854 = vmatprep.subr.bf16.mxu0 %v4696_v56 }
  0x3c   :  { %2885 = vmatprep.subr.bf16.mxu1 %v3892_v22 }
  0x3e   :  { %2856 = vmatpush3.bf16.msra.mxu0 %v4046_v30 }
  0x3f   :  { %2887 = vmatpush1.bf16.msra.mxu1 %v3925_v37  ;;  %2857 = vmatprep.subr.bf16.mxu0 %v4696_v56 }
  0x40   :  { %2889 = vmatprep.subr.bf16.mxu1 %v3931_v39 }
  0x42   :  { %2859 = vmatpush3.bf16.msra.mxu0 %v4056_v34 }
  0x43   :  { %2891 = vmatpush1.bf16.msra.mxu1 %v3949_v48  ;;  %2893 = vmatprep.subr.bf16.mxu0 %v3684_v9 }
  0x44   :  { %2924 = vmatprep.subr.bf16.mxu1 %v4696_v56 }
  0x93   :  { %v269_v51 = vpop.permute.xlu0 %268 }
  0x94   :  { %v292_v62 = vmul.f32 %v4064_v50, %v269_v51  ;;  %v293_v11 = vmul.f32 %v4066_v57, %v269_v51  ;;  %v295_v26 = vmul.f32 %v4076_v31, %v269_v51  ;;  %v4082_v57 = vrot.slane %v95_v46, %v282_v33 }
  0xf8   :  { %v186_v6 = vpop.f32.mrb[0].mxu0 }
  0xf9   :  { %v262_v12 = vadd.f32 %v186_v6, %v116_v59  ;;  %v257_v15 = vpop.f32.mrb[0].mxu1  ;;  %v188_v16 = vpop.f32.mrb[1].mxu0  ;;  %v118_v59 = vld [vmem:[%s4691_s0 + $0x10] sm:$0xff] }
  0xfa   :  { %v263_v24 = vadd.f32 %v188_v16, %v117_v5  ;;  %v259_v25 = vpop.f32.mrb[1].mxu1  ;;  %v264_v61 = vadd.f32 %v257_v15, %v118_v59  ;;  %v4726_v59 = vmov 0.0|0.0  }
  0xfb   :  { %v296_v35 = vadd.f32 %v292_v62, %v262_v12  ;;  %v265_v50 = vadd.f32 %v259_v25, %v119_v43  ;;  %v294_v62 = vmul.f32 %v4082_v57, %v269_v51 }
  0xfc   :  { %v297_v47 = vadd.f32 %v293_v11, %v263_v24 }
  0xfd   :  { %v2294_v56 = vmul.f32 -1.442695, %v296_v35  ;;  %v299_v42 = vadd.f32 %v295_v26, %v265_v50  ;;  %v298_v6 = vadd.f32 %v294_v62, %v264_v61  ;;  %v4149_v61 = vld [vmem:[%s4693_s5] ss:$0 sm:$0xff] }
  0xfe   :  { %v2295_v3 = vmul.f32 -1.442695, %v297_v47  ;;  %v4725_v47 = vmov 0.0   ;;  %4727 = vst [vmem:[#allocation8_spill] sm:$0xff] %v4149_v61 }
  0xff   :  { %3482 = vpow2.f32 %v2294_v56  ;;  %v2296_v5 = vmul.f32 -1.442695, %v299_v42  ;;  %v13_v42 = vstv %s4692_s7 }
 0x100   :  { %3484 = vpow2.f32 %v2295_v3  ;;  %14 = vst [vmem:[#allocation2] sm:$0x1] %v13_v42  ;;  %v2301_v42 = vld [vmem:[%s4691_s0 + $0x28] sm:$0xff] }
 0x101   :  { %3486 = vpow2.f32 %v2296_v5 }
 0x102   :  { %3488 = vtanh.f32 %v298_v6 }
 0x109   :  { %v3483_v11 = vpop.eup %3482 }
 0x10a   :  { %v3485_v12 = vpop.eup %3484  ;;  %v303_v16 = vadd.f32 1.0, %v3483_v11 }
 0x10b   :  { %v309_v24 = vadd.f32 1.0, %v3485_v12  ;;  %v3487_v56 = vpop.eup %3486 }
 0x10c   :  { %3490 = vrcp.f32 %v303_v16  ;;  %v3489_v46 = vpop.eup %3488  ;;  %v316_v3 = vadd.f32 1.0, %v3487_v56  ;;  %v4155_v16 = vld [vmem:[%s4694_s6] ss:$0 sm:$0xff] }
 0x10d   :  { %3492 = vrcp.f32 %v309_v24  ;;  %4728 = vst [vmem:[#allocation9_spill] sm:$0xff] %v4155_v16 }
 0x10e   :  { %3494 = vrcp.f32 %v316_v3 }
 0x116   :  { %v3491_v25 = vpop.eup %3490 }
 0x117   :  { %v3493_v33 = vpop.eup %3492  ;;  %v320_v35 = vmul.f32 %v3491_v25, %v3489_v46 }
 0x118   :  { %v319_v26 = vmul.f32 0.0, %v3493_v33  ;;  %v3495_v51 = vpop.eup %3494  ;;  %v4158_v33 = vld [vmem:[#allocation2] ss:$0 sm:$0xff] }
 0x119   :  { %4729 = vst [vmem:[#allocation10_spill] sm:$0xff] %v4158_v33 }
 0x11a   :  { %v4088_v50 = vadd.f32 %v320_v35, %v319_v26 }
 0x11c   :  { %3496 = vtanh.f32 %v4088_v50 }
 0x126   :  { %v3497_v15 = vpop.eup %3496 }
 0x127   :  { %v323_v43 = vmul.f32 %v3497_v15, %v3495_v51  ;;  %v4730_v51 = vld [vmem:[#allocation3_spill] sm:$0xff] }
 0x129   :  { %2525 = vmatmul.mubr.f32.vlgmr.msra.gmra.mrb[2].mxu0 %v323_v43  ;;  %491 = vmatmul.mubr.f32.vlgmr.msra.gmra.mrb[2].mxu1 %v323_v43 }
 0x12a   :  { %2895 = vmatpush1.bf16.msra.mxu0 %v3698_v14  ;;  %561 = vmatprep.mubr.f32.mxu0 %v4725_v47 }
 0x12b   :  { %2897 = vmatprep.subr.bf16.mxu0 %v3713_v19  ;;  %2926 = vmatpush3.bf16.msra.mxu1 %v3983_v55 }
 0x12c   :  { %2927 = vmatprep.subr.bf16.mxu1 %v4726_v59  ;;  %2559 = vmatprep.mubr.msk.f32.mxu1 %vm3616_vm0, %v4725_v47 }
 0x12e   :  { %2899 = vmatpush1.bf16.msra.mxu0 %v3738_v27 }
 0x12f   :  { %2901 = vmatprep.subr.bf16.mxu0 %v3751_v32  ;;  %2929 = vmatpush3.bf16.msra.mxu1 %v3995_v60 }
 0x130   :  { %2930 = vmatprep.subr.bf16.mxu1 %v4726_v59 }
 0x132   :  { %2903 = vmatpush1.bf16.msra.mxu0 %v3776_v40 }
 0x133   :  { %2905 = vmatprep.subr.bf16.mxu0 %v3790_v45  ;;  %2932 = vmatpush3.bf16.msra.mxu1 %v4005_v63 }
 0x134   :  { %2933 = vmatprep.subr.bf16.mxu1 %v4726_v59 }
 0x136   :  { %2907 = vmatpush1.bf16.msra.mxu0 %v3815_v53 }
 0x137   :  { %2909 = vmatprep.subr.bf16.mxu0 %v3829_v58  ;;  %2935 = vmatpush3.bf16.msra.mxu1 %v4015_v7 }
 0x138   :  { %2936 = vmatprep.subr.bf16.mxu1 %v4726_v59 }
 0x13a   :  { %2911 = vmatpush1.bf16.msra.mxu0 %v3851_v1 }
 0x13b   :  { %2913 = vmatprep.subr.bf16.mxu0 %v3865_v8  ;;  %2938 = vmatpush3.bf16.msra.mxu1 %v4025_v13 }
 0x13c   :  { %2939 = vmatprep.subr.bf16.mxu1 %v4726_v59 }
 0x13e   :  { %2915 = vmatpush1.bf16.msra.mxu0 %v3890_v21 }
 0x13f   :  { %2917 = vmatprep.subr.bf16.mxu0 %v3906_v29  ;;  %2941 = vmatpush3.bf16.msra.mxu1 %v4035_v20 }
 0x140   :  { %2942 = vmatprep.subr.bf16.mxu1 %v4726_v59 }
 0x142   :  { %2919 = vmatpush1.bf16.msra.mxu0 %v3929_v38 }
 0x143   :  { %2921 = vmatprep.subr.bf16.mxu0 %v3940_v44  ;;  %2944 = vmatpush3.bf16.msra.mxu1 %v4046_v30 }
 0x144   :  { %2945 = vmatprep.subr.bf16.mxu1 %v4726_v59 }
 0x146   :  { %2923 = vmatpush1.bf16.msra.mxu0 %v3953_v49 }
 0x147   :  { %2949 = vmatprep.subr.bf16.mxu0 %v3673_v4  ;;  %2947 = vmatpush3.bf16.msra.mxu1 %v4056_v34 }
 0x148   :  { %2981 = vmatprep.subr.bf16.mxu1 %v3684_v9 }
 0x149   :  { %562 = vmatmul.mubr.f32.vlgmr.msra.gmra.mrb[4].mxu0 %v323_v43  ;;  %v2300_v43 = vld [vmem:[%s4691_s0 + $0x20] sm:$0xff] }
 0x14a   :  { %2951 = vmatpush1.bf16.msra.mxu0 %v3686_v10  ;;  %757 = vmatprep.mubr.f32.mxu0 %v4725_v47 }
 0x14b   :  { %2953 = vmatprep.subr.bf16.mxu0 %v3711_v18 }
 0x14e   :  { %2955 = vmatpush1.bf16.msra.mxu0 %v3725_v23 }
 0x14f   :  { %2957 = vmatprep.subr.bf16.mxu0 %v3740_v28 }
 0x152   :  { %2959 = vmatpush1.bf16.msra.mxu0 %v3763_v36 }
 0x153   :  { %2961 = vmatprep.subr.bf16.mxu0 %v3778_v41 }
 0x156   :  { %2963 = vmatpush1.bf16.msra.mxu0 %v3811_v52 }
 0x157   :  { %2965 = vmatprep.subr.bf16.mxu0 %v3817_v54 }
 0x15a   :  { %2967 = vmatpush1.bf16.msra.mxu0 %v3847_v0 }
 0x15b   :  { %2969 = vmatprep.subr.bf16.mxu0 %v3853_v2 }
 0x15e   :  { %2971 = vmatpush1.bf16.msra.mxu0 %v3883_v17 }
 0x15f   :  { %2973 = vmatprep.subr.bf16.mxu0 %v3892_v22 }
 0x162   :  { %2975 = vmatpush1.bf16.msra.mxu0 %v3925_v37 }
 0x163   :  { %2977 = vmatprep.subr.bf16.mxu0 %v3931_v39 }
 0x166   :  { %2979 = vmatpush1.bf16.msra.mxu0 %v3949_v48 }
 0x167   :  { %3012 = vmatprep.subr.bf16.mxu0 %v4726_v59 }
 0x1fc   :  { %v396_v62 = vpop.f32.mrb[2].mxu0  ;;  %v492_v5 = vpop.f32.mrb[2].mxu1 }
 0x1fd   :  { %v397_v6 = vadd.f32 %v4149_v61, %v396_v62  ;;  %v2526_v11 = vpop.f32.mrb[3].mxu0  ;;  %v494_v12 = vpop.f32.mrb[3].mxu1 }
 0x1fe   :  { %v569_v11 = vadd.f32 %v2301_v42, %v494_v12 }
 0x1ff   :  { %v400_v24 = vmax.f32 %v397_v6, 0.0  ;;  %v568_v6 = vadd.f32 %v2300_v43, %v492_v5  ;;  %v2302_v5 = vld [vmem:[%s4691_s0 + $0x30] sm:$0xff] }
 0x201   :  { %v407_v56 = vmul.f32 %v4155_v16, %v400_v24  ;;  %v4732_v24 = vld [vmem:[#allocation5_spill] sm:$0xff] }
 0x203   :  { %408 = vadd.xlane.f32.xlu0 %v407_v56 }
 0x21c   :  { %v563_v46 = vpop.f32.mrb[4].mxu0 }
 0x21d   :  { %v565_v25 = vpop.f32.mrb[5].mxu0  ;;  %v570_v42 = vadd.f32 %v2302_v5, %v563_v46 }
 0x290   :  { %v409_v35 = vpop.xlane.xlu0 %408 }
 0x291   :  { %v416_v3 = vadd.f32 %v4158_v33, %v409_v35  ;;  %v4733_v35 = vld [vmem:[#allocation6_spill] sm:$0xff] }
 0x293   :  { %v417_v26 = vmax.f32 %v416_v3, 0.0 }
 0x295   :  { %v4162_v15 = vadd.f32 %v417_v26, %v4730_v51 }
 0x297   :  { %4731 = vst [vmem:[#allocation3_spill] sm:$0xff] %v4162_v15  ;;  %420 = vst.msk [vmem:[%s4695_s8] sm:$0xff] %vm419_vm1, %v4162_v15  ;;  %574 = vperm.xlu1 %3481, %v4162_v15   ;;  %v2303_v15 = vld [vmem:[%s4691_s0 + $0x38] sm:$0xff] }
 0x298   :  { %v571_v48 = vadd.f32 %v2303_v15, %v565_v25 }
 0x316   :  { %v575_v62 = vpop.permute.xlu1 %574 }
 0x317   :  { %v577_v56 = vmul.f32 %v575_v62, %v4732_v24  ;;  %v578_v3 = vmul.f32 %v575_v62, %v4733_v35  ;;  %v580_v61 = vmul.f32 %v575_v62, %v4076_v31  ;;  %v579_v43 = vmul.f32 %v575_v62, %v4082_v57 }
 0x319   :  { %v581_v26 = vadd.f32 %v577_v56, %v568_v6  ;;  %v582_v51 = vadd.f32 %v578_v3, %v569_v11  ;;  %v584_v12 = vadd.f32 %v580_v61, %v571_v48  ;;  %v583_v11 = vadd.f32 %v579_v43, %v570_v42 }
 0x31b   :  { %v2304_v33 = vmul.f32 -1.442695, %v581_v26  ;;  %v2305_v16 = vmul.f32 -1.442695, %v582_v51  ;;  %v2306_v6 = vmul.f32 -1.442695, %v584_v12 }
 0x31c   :  { %v4735_v12 = vld [vmem:[#allocation8_spill] sm:$0xff] }
 0x31d   :  { %3498 = vpow2.f32 %v2304_v33 }
 0x31e   :  { %3500 = vpow2.f32 %v2305_v16 }
 0x31f   :  { %3502 = vpow2.f32 %v2306_v6 }
 0x320   :  { %3504 = vtanh.f32 %v583_v11 }
 0x327   :  { %v3499_v56 = vpop.eup %3498 }
 0x328   :  { %v3501_v3 = vpop.eup %3500  ;;  %v588_v35 = vadd.f32 1.0, %v3499_v56  ;;  %v4736_v56 = vld [vmem:[#allocation9_spill] sm:$0xff] }
 0x329   :  { %v594_v26 = vadd.f32 1.0, %v3501_v3  ;;  %v3503_v25 = vpop.eup %3502 }
 0x32a   :  { %3506 = vrcp.f32 %v588_v35  ;;  %v3505_v16 = vpop.eup %3504  ;;  %v601_v51 = vadd.f32 1.0, %v3503_v25 }
 0x32b   :  { %3508 = vrcp.f32 %v594_v26 }
 0x32c   :  { %3510 = vrcp.f32 %v601_v51 }
 0x334   :  { %v3507_v33 = vpop.eup %3506 }
 0x335   :  { %v3509_v15 = vpop.eup %3508  ;;  %v605_v31 = vmul.f32 %v3507_v33, %v3505_v16  ;;  %v4737_v33 = vld [vmem:[#allocation10_spill] sm:$0xff] }
 0x336   :  { %v604_v48 = vmul.f32 %v3509_v15, %v4088_v50  ;;  %v3511_v46 = vpop.eup %3510 }
 0x338   :  { %v4187_v61 = vadd.f32 %v605_v31, %v604_v48  ;;  %v4734_v31 = vld [vmem:[#allocation4_spill] sm:$0xff]  ;;  %v4738_v48 = vld [vmem:[#allocation3_spill] sm:$0xff] }
 0x33a   :  { %3512 = vtanh.f32 %v4187_v61 }
 0x344   :  { %v3513_v62 = vpop.eup %3512 }
 0x345   :  { %v608_v5 = vmul.f32 %v3513_v62, %v3511_v46  ;;  %v2308_v62 = vld [vmem:[%s4691_s0 + $0x40] sm:$0xff] }
 0x347   :  { %2560 = vmatmul.mubr.f32.vlgmr.msra.gmra.mrb[4].mxu1 %v608_v5  ;;  %758 = vmatmul.mubr.f32.vlgmr.msra.gmra.mrb[6].mxu0 %v608_v5 }
 0x348   :  { %2983 = vmatpush1.bf16.msra.mxu1 %v3698_v14  ;;  %828 = vmatprep.mubr.f32.mxu1 %v4725_v47 }
 0x349   :  { %2985 = vmatprep.subr.bf16.mxu1 %v3713_v19  ;;  %3014 = vmatpush3.bf16.msra.mxu0 %v3983_v55 }
 0x34a   :  { %3015 = vmatprep.subr.bf16.mxu0 %v4726_v59  ;;  %2594 = vmatprep.mubr.msk.f32.mxu0 %vm3616_vm0, %v4725_v47 }
 0x34c   :  { %2987 = vmatpush1.bf16.msra.mxu1 %v3738_v27 }
 0x34d   :  { %2989 = vmatprep.subr.bf16.mxu1 %v3751_v32  ;;  %3017 = vmatpush3.bf16.msra.mxu0 %v3995_v60 }
 0x34e   :  { %3018 = vmatprep.subr.bf16.mxu0 %v4726_v59 }
 0x350   :  { %2991 = vmatpush1.bf16.msra.mxu1 %v3776_v40 }
 0x351   :  { %2993 = vmatprep.subr.bf16.mxu1 %v3790_v45  ;;  %3020 = vmatpush3.bf16.msra.mxu0 %v4005_v63 }
 0x352   :  { %3021 = vmatprep.subr.bf16.mxu0 %v4726_v59 }
 0x354   :  { %2995 = vmatpush1.bf16.msra.mxu1 %v3815_v53 }
 0x355   :  { %2997 = vmatprep.subr.bf16.mxu1 %v3829_v58  ;;  %3023 = vmatpush3.bf16.msra.mxu0 %v4015_v7 }
 0x356   :  { %3024 = vmatprep.subr.bf16.mxu0 %v4726_v59 }
 0x358   :  { %2999 = vmatpush1.bf16.msra.mxu1 %v3851_v1 }
 0x359   :  { %3001 = vmatprep.subr.bf16.mxu1 %v3865_v8  ;;  %3026 = vmatpush3.bf16.msra.mxu0 %v4025_v13 }
 0x35a   :  { %3027 = vmatprep.subr.bf16.mxu0 %v4726_v59 }
 0x35c   :  { %3003 = vmatpush1.bf16.msra.mxu1 %v3890_v21 }
 0x35d   :  { %3005 = vmatprep.subr.bf16.mxu1 %v3906_v29  ;;  %3029 = vmatpush3.bf16.msra.mxu0 %v4035_v20 }
 0x35e   :  { %3030 = vmatprep.subr.bf16.mxu0 %v4726_v59 }
 0x360   :  { %3007 = vmatpush1.bf16.msra.mxu1 %v3929_v38 }
 0x361   :  { %3009 = vmatprep.subr.bf16.mxu1 %v3940_v44  ;;  %3032 = vmatpush3.bf16.msra.mxu0 %v4046_v30 }
 0x362   :  { %3033 = vmatprep.subr.bf16.mxu0 %v4726_v59 }
 0x364   :  { %3011 = vmatpush1.bf16.msra.mxu1 %v3953_v49 }
 0x365   :  { %3037 = vmatprep.subr.bf16.mxu1 %v3673_v4  ;;  %3035 = vmatpush3.bf16.msra.mxu0 %v4056_v34 }
 0x366   :  { %3069 = vmatprep.subr.bf16.mxu0 %v3684_v9 }
 0x367   :  { %829 = vmatmul.mubr.f32.vlgmr.msra.gmra.mrb[6].mxu1 %v608_v5  ;;  %v2309_v5 = vld [vmem:[%s4691_s0 + $0x48] sm:$0xff] }
 0x368   :  { %3039 = vmatpush1.bf16.msra.mxu1 %v3686_v10  ;;  %1024 = vmatprep.mubr.f32.mxu1 %v4725_v47 }
 0x369   :  { %3041 = vmatprep.subr.bf16.mxu1 %v3711_v18 }
 0x36c   :  { %3043 = vmatpush1.bf16.msra.mxu1 %v3725_v23 }
 0x36d   :  { %3045 = vmatprep.subr.bf16.mxu1 %v3740_v28 }
 0x370   :  { %3047 = vmatpush1.bf16.msra.mxu1 %v3763_v36 }
 0x371   :  { %3049 = vmatprep.subr.bf16.mxu1 %v3778_v41 }
 0x374   :  { %3051 = vmatpush1.bf16.msra.mxu1 %v3811_v52 }
 0x375   :  { %3053 = vmatprep.subr.bf16.mxu1 %v3817_v54 }
 0x378   :  { %3055 = vmatpush1.bf16.msra.mxu1 %v3847_v0 }
 0x379   :  { %3057 = vmatprep.subr.bf16.mxu1 %v3853_v2 }
 0x37c   :  { %3059 = vmatpush1.bf16.msra.mxu1 %v3883_v17 }
 0x37d   :  { %3061 = vmatprep.subr.bf16.mxu1 %v3892_v22 }
 0x380   :  { %3063 = vmatpush1.bf16.msra.mxu1 %v3925_v37 }
 0x381   :  { %3065 = vmatprep.subr.bf16.mxu1 %v3931_v39 }
 0x384   :  { %3067 = vmatpush1.bf16.msra.mxu1 %v4734_v31 }
 0x385   :  { %3100 = vmatprep.subr.bf16.mxu1 %v4726_v59 }
 0x41a   :  { %v675_v50 = vpop.f32.mrb[4].mxu1  ;;  %v759_v35 = vpop.f32.mrb[6].mxu0 }
 0x41b   :  { %v676_v43 = vadd.f32 %v4735_v12, %v675_v50  ;;  %v2561_v42 = vpop.f32.mrb[5].mxu1  ;;  %v761_v6 = vpop.f32.mrb[7].mxu0 }
 0x41c   :  { %v836_v42 = vadd.f32 %v2309_v5, %v761_v6 }
 0x41d   :  { %v679_v11 = vmax.f32 %v676_v43, 0.0  ;;  %v835_v43 = vadd.f32 %v2308_v62, %v759_v35  ;;  %v2310_v35 = vld [vmem:[%s4691_s0 + $0x50] sm:$0xff] }
 0x41f   :  { %v680_v3 = vmul.f32 %v4736_v56, %v679_v11  ;;  %v4741_v56 = vld [vmem:[#allocation7_spill] sm:$0xff] }
 0x421   :  { %681 = vadd.xlane.f32.xlu1 %v680_v3  ;;  %v4740_v3 = vld [vmem:[#allocation6_spill] sm:$0xff] }
 0x43a   :  { %v830_v26 = vpop.f32.mrb[6].mxu1 }
 0x43b   :  { %v832_v25 = vpop.f32.mrb[7].mxu1  ;;  %v837_v5 = vadd.f32 %v2310_v35, %v830_v26 }
 0x4ae   :  { %v682_v16 = vpop.xlane.xlu1 %681 }
 0x4af   :  { %v683_v15 = vadd.f32 %v4737_v33, %v682_v16 }
 0x4b1   :  { %v684_v51 = vmax.f32 %v683_v15, 0.0 }
 0x4b3   :  { %v4246_v46 = vadd.f32 %v684_v51, %v4738_v48  ;;  %v2311_v48 = vld [vmem:[%s4691_s0 + $0x58] sm:$0xff] }
 0x4b4   :  { %v838_v31 = vadd.f32 %v2311_v48, %v832_v25 }
 0x4b5   :  { %4739 = vst [vmem:[#allocation5_spill] sm:$0xff] %v4246_v46  ;;  %2307 = vst.msk [vmem:[%s4695_s8 + $0x8] sm:$0xff] %vm419_vm1, %v4246_v46  ;;  %841 = vperm.xlu0 %3480, %v4246_v46  }
 0x534   :  { %v842_v50 = vpop.permute.xlu0 %841 }
 0x535   :  { %v844_v11 = vmul.f32 %v842_v50, %v4732_v24  ;;  %v845_v16 = vmul.f32 %v842_v50, %v4740_v3  ;;  %v847_v12 = vmul.f32 %v842_v50, %v4741_v56  ;;  %v846_v62 = vmul.f32 %v842_v50, %v4082_v57 }
 0x537   :  { %v848_v15 = vadd.f32 %v844_v11, %v835_v43  ;;  %v849_v51 = vadd.f32 %v845_v16, %v836_v42  ;;  %v851_v6 = vadd.f32 %v847_v12, %v838_v31  ;;  %v850_v42 = vadd.f32 %v846_v62, %v837_v5 }
 0x539   :  { %v2312_v46 = vmul.f32 -1.442695, %v848_v15  ;;  %v2313_v33 = vmul.f32 -1.442695, %v849_v51  ;;  %v2314_v43 = vmul.f32 -1.442695, %v851_v6 }
 0x53a   :  { %v4743_v6 = vld [vmem:[#allocation8_spill] sm:$0xff] }
 0x53b   :  { %3514 = vpow2.f32 %v2312_v46 }
 0x53c   :  { %3516 = vpow2.f32 %v2313_v33 }
 0x53d   :  { %3518 = vpow2.f32 %v2314_v43 }
 0x53e   :  { %3520 = vtanh.f32 %v850_v42 }
 0x545   :  { %v3515_v11 = vpop.eup %3514 }
 0x546   :  { %v3517_v16 = vpop.eup %3516  ;;  %v855_v3 = vadd.f32 1.0, %v3515_v11  ;;  %v4744_v11 = vld [vmem:[#allocation9_spill] sm:$0xff] }
 0x547   :  { %v861_v15 = vadd.f32 1.0, %v3517_v16  ;;  %v3519_v25 = vpop.eup %3518 }
 0x548   :  { %3522 = vrcp.f32 %v855_v3  ;;  %v3521_v33 = vpop.eup %3520  ;;  %v868_v48 = vadd.f32 1.0, %v3519_v25 }
 0x549   :  { %3524 = vrcp.f32 %v861_v15 }
 0x54a   :  { %3526 = vrcp.f32 %v868_v48 }
 0x552   :  { %v3523_v46 = vpop.eup %3522 }
 0x553   :  { %v3525_v51 = vpop.eup %3524  ;;  %v872_v56 = vmul.f32 %v3523_v46, %v3521_v33  ;;  %v4745_v46 = vld [vmem:[#allocation10_spill] sm:$0xff] }
 0x554   :  { %v871_v31 = vmul.f32 %v3525_v51, %v4187_v61  ;;  %v3527_v26 = vpop.eup %3526  ;;  %v4742_v61 = vld [vmem:[#allocation4_spill] sm:$0xff] }
 0x556   :  { %v4271_v12 = vadd.f32 %v872_v56, %v871_v31  ;;  %v4746_v31 = vld [vmem:[#allocation5_spill] sm:$0xff] }
 0x558   :  { %3528 = vtanh.f32 %v4271_v12 }
 0x562   :  { %v3529_v50 = vpop.eup %3528 }
 0x563   :  { %v875_v35 = vmul.f32 %v3529_v50, %v3527_v26  ;;  %v2316_v50 = vld [vmem:[%s4691_s0 + $0x60] sm:$0xff] }
 0x565   :  { %2595 = vmatmul.mubr.f32.vlgmr.msra.gmra.mrb[8].mxu0 %v875_v35  ;;  %1025 = vmatmul.mubr.f32.vlgmr.msra.gmra.mrb[8].mxu1 %v875_v35 }
 0x566   :  { %3071 = vmatpush1.bf16.msra.mxu0 %v3698_v14  ;;  %1095 = vmatprep.mubr.f32.mxu0 %v4725_v47 }
 0x567   :  { %3073 = vmatprep.subr.bf16.mxu0 %v3713_v19  ;;  %3102 = vmatpush3.bf16.msra.mxu1 %v3983_v55 }
 0x568   :  { %3103 = vmatprep.subr.bf16.mxu1 %v4726_v59  ;;  %2629 = vmatprep.mubr.msk.f32.mxu1 %vm3616_vm0, %v4725_v47 }
 0x56a   :  { %3075 = vmatpush1.bf16.msra.mxu0 %v3738_v27 }
 0x56b   :  { %3077 = vmatprep.subr.bf16.mxu0 %v3751_v32  ;;  %3105 = vmatpush3.bf16.msra.mxu1 %v3995_v60 }
 0x56c   :  { %3106 = vmatprep.subr.bf16.mxu1 %v4726_v59 }
 0x56e   :  { %3079 = vmatpush1.bf16.msra.mxu0 %v3776_v40 }
 0x56f   :  { %3081 = vmatprep.subr.bf16.mxu0 %v3790_v45  ;;  %3108 = vmatpush3.bf16.msra.mxu1 %v4005_v63 }
 0x570   :  { %3109 = vmatprep.subr.bf16.mxu1 %v4726_v59 }
 0x572   :  { %3083 = vmatpush1.bf16.msra.mxu0 %v3815_v53 }
 0x573   :  { %3085 = vmatprep.subr.bf16.mxu0 %v3829_v58  ;;  %3111 = vmatpush3.bf16.msra.mxu1 %v4015_v7 }
 0x574   :  { %3112 = vmatprep.subr.bf16.mxu1 %v4726_v59 }
 0x576   :  { %3087 = vmatpush1.bf16.msra.mxu0 %v3851_v1 }
 0x577   :  { %3089 = vmatprep.subr.bf16.mxu0 %v3865_v8  ;;  %3114 = vmatpush3.bf16.msra.mxu1 %v4025_v13 }
 0x578   :  { %3115 = vmatprep.subr.bf16.mxu1 %v4726_v59 }
 0x57a   :  { %3091 = vmatpush1.bf16.msra.mxu0 %v3890_v21 }
 0x57b   :  { %3093 = vmatprep.subr.bf16.mxu0 %v3906_v29  ;;  %3117 = vmatpush3.bf16.msra.mxu1 %v4035_v20 }
 0x57c   :  { %3118 = vmatprep.subr.bf16.mxu1 %v4726_v59 }
 0x57e   :  { %3095 = vmatpush1.bf16.msra.mxu0 %v3929_v38 }
 0x57f   :  { %3097 = vmatprep.subr.bf16.mxu0 %v3940_v44  ;;  %3120 = vmatpush3.bf16.msra.mxu1 %v4046_v30 }
 0x580   :  { %3121 = vmatprep.subr.bf16.mxu1 %v4726_v59 }
 0x582   :  { %3099 = vmatpush1.bf16.msra.mxu0 %v3953_v49 }
 0x583   :  { %3125 = vmatprep.subr.bf16.mxu0 %v3673_v4  ;;  %3123 = vmatpush3.bf16.msra.mxu1 %v4056_v34 }
 0x584   :  { %3157 = vmatprep.subr.bf16.mxu1 %v3684_v9 }
 0x585   :  { %1096 = vmatmul.mubr.f32.vlgmr.msra.gmra.mrb[10].mxu0 %v875_v35  ;;  %v2317_v35 = vld [vmem:[%s4691_s0 + $0x68] sm:$0xff] }
 0x586   :  { %3127 = vmatpush1.bf16.msra.mxu0 %v3686_v10  ;;  %1291 = vmatprep.mubr.f32.mxu0 %v4725_v47 }
 0x587   :  { %3129 = vmatprep.subr.bf16.mxu0 %v3711_v18 }
 0x58a   :  { %3131 = vmatpush1.bf16.msra.mxu0 %v3725_v23 }
 0x58b   :  { %3133 = vmatprep.subr.bf16.mxu0 %v3740_v28 }
 0x58e   :  { %3135 = vmatpush1.bf16.msra.mxu0 %v3763_v36 }
 0x58f   :  { %3137 = vmatprep.subr.bf16.mxu0 %v3778_v41 }
 0x592   :  { %3139 = vmatpush1.bf16.msra.mxu0 %v3811_v52 }
 0x593   :  { %3141 = vmatprep.subr.bf16.mxu0 %v3817_v54 }
 0x596   :  { %3143 = vmatpush1.bf16.msra.mxu0 %v3847_v0 }
 0x597   :  { %3145 = vmatprep.subr.bf16.mxu0 %v3853_v2 }
 0x59a   :  { %3147 = vmatpush1.bf16.msra.mxu0 %v3883_v17 }
 0x59b   :  { %3149 = vmatprep.subr.bf16.mxu0 %v3892_v22 }
 0x59e   :  { %3151 = vmatpush1.bf16.msra.mxu0 %v3925_v37 }
 0x59f   :  { %3153 = vmatprep.subr.bf16.mxu0 %v3931_v39 }
 0x5a2   :  { %3155 = vmatpush1.bf16.msra.mxu0 %v4742_v61 }
 0x5a3   :  { %3188 = vmatprep.subr.bf16.mxu0 %v4726_v59 }
 0x638   :  { %v942_v56 = vpop.f32.mrb[8].mxu0  ;;  %v1026_v3 = vpop.f32.mrb[8].mxu1 }
 0x639   :  { %v943_v62 = vadd.f32 %v4743_v6, %v942_v56  ;;  %v2596_v5 = vpop.f32.mrb[9].mxu0  ;;  %v1028_v43 = vpop.f32.mrb[9].mxu1 }
 0x63a   :  { %v1103_v5 = vadd.f32 %v2317_v35, %v1028_v43 }
 0x63b   :  { %v946_v42 = vmax.f32 %v943_v62, 0.0  ;;  %v1102_v62 = vadd.f32 %v2316_v50, %v1026_v3  ;;  %v2318_v3 = vld [vmem:[%s4691_s0 + $0x70] sm:$0xff] }
 0x63d   :  { %v947_v16 = vmul.f32 %v4744_v11, %v946_v42  ;;  %v4749_v11 = vld [vmem:[#allocation7_spill] sm:$0xff] }
 0x63f   :  { %948 = vadd.xlane.f32.xlu1 %v947_v16  ;;  %v4748_v16 = vld [vmem:[#allocation6_spill] sm:$0xff] }
 0x658   :  { %v1097_v15 = vpop.f32.mrb[10].mxu0 }
 0x659   :  { %v1099_v25 = vpop.f32.mrb[11].mxu0  ;;  %v1104_v35 = vadd.f32 %v2318_v3, %v1097_v15 }
 0x6cc   :  { %v949_v33 = vpop.xlane.xlu1 %948 }
 0x6cd   :  { %v950_v51 = vadd.f32 %v4745_v46, %v949_v33 }
 0x6cf   :  { %v951_v48 = vmax.f32 %v950_v51, 0.0 }
 0x6d1   :  { %v4330_v26 = vadd.f32 %v951_v48, %v4746_v31  ;;  %v2319_v31 = vld [vmem:[%s4691_s0 + $0x78] sm:$0xff] }
 0x6d2   :  { %v1105_v61 = vadd.f32 %v2319_v31, %v1099_v25 }
 0x6d3   :  { %4747 = vst [vmem:[#allocation3_spill] sm:$0xff] %v4330_v26  ;;  %2315 = vst.msk [vmem:[%s4695_s8 + $0x10] sm:$0xff] %vm419_vm1, %v4330_v26  ;;  %1108 = vperm.xlu1 %3481, %v4330_v26  }
 0x752   :  { %v1109_v56 = vpop.permute.xlu1 %1108 }
 0x753   :  { %v1111_v42 = vmul.f32 %v1109_v56, %v4732_v24  ;;  %v1112_v33 = vmul.f32 %v1109_v56, %v4748_v16  ;;  %v1114_v6 = vmul.f32 %v1109_v56, %v4749_v11  ;;  %v1113_v50 = vmul.f32 %v1109_v56, %v4082_v57 }
 0x755   :  { %v1115_v51 = vadd.f32 %v1111_v42, %v1102_v62  ;;  %v1116_v48 = vadd.f32 %v1112_v33, %v1103_v5  ;;  %v1118_v43 = vadd.f32 %v1114_v6, %v1105_v61  ;;  %v1117_v5 = vadd.f32 %v1113_v50, %v1104_v35 }
 0x757   :  { %v2320_v26 = vmul.f32 -1.442695, %v1115_v51  ;;  %v2321_v46 = vmul.f32 -1.442695, %v1116_v48  ;;  %v2322_v62 = vmul.f32 -1.442695, %v1118_v43 }
 0x758   :  { %v4751_v43 = vld [vmem:[#allocation8_spill] sm:$0xff] }
 0x759   :  { %3530 = vpow2.f32 %v2320_v26 }
 0x75a   :  { %3532 = vpow2.f32 %v2321_v46 }
 0x75b   :  { %3534 = vpow2.f32 %v2322_v62 }
 0x75c   :  { %3536 = vtanh.f32 %v1117_v5 }
 0x763   :  { %v3531_v42 = vpop.eup %3530 }
 0x764   :  { %v3533_v33 = vpop.eup %3532  ;;  %v1122_v16 = vadd.f32 1.0, %v3531_v42  ;;  %v4752_v42 = vld [vmem:[#allocation9_spill] sm:$0xff] }
 0x765   :  { %v1128_v51 = vadd.f32 1.0, %v3533_v33  ;;  %v3535_v25 = vpop.eup %3534 }
 0x766   :  { %3538 = vrcp.f32 %v1122_v16  ;;  %v3537_v46 = vpop.eup %3536  ;;  %v1135_v31 = vadd.f32 1.0, %v3535_v25 }
 0x767   :  { %3540 = vrcp.f32 %v1128_v51 }
 0x768   :  { %3542 = vrcp.f32 %v1135_v31 }
 0x770   :  { %v3539_v26 = vpop.eup %3538 }
 0x771   :  { %v3541_v48 = vpop.eup %3540  ;;  %v1139_v11 = vmul.f32 %v3539_v26, %v3537_v46  ;;  %v4753_v26 = vld [vmem:[#allocation10_spill] sm:$0xff] }
 0x772   :  { %v1138_v61 = vmul.f32 %v3541_v48, %v4271_v12  ;;  %v3543_v15 = vpop.eup %3542  ;;  %v4750_v12 = vld [vmem:[#allocation4_spill] sm:$0xff] }
 0x774   :  { %v4355_v6 = vadd.f32 %v1139_v11, %v1138_v61  ;;  %v4754_v61 = vld [vmem:[#allocation3_spill] sm:$0xff] }
 0x776   :  { %3544 = vtanh.f32 %v4355_v6 }
 0x780   :  { %v3545_v56 = vpop.eup %3544 }
 0x781   :  { %v1142_v3 = vmul.f32 %v3545_v56, %v3543_v15  ;;  %v2324_v56 = vld [vmem:[%s4691_s0 + $0x80] sm:$0xff] }
 0x783   :  { %2630 = vmatmul.mubr.f32.vlgmr.msra.gmra.mrb[10].mxu1 %v1142_v3  ;;  %1292 = vmatmul.mubr.f32.vlgmr.msra.gmra.mrb[12].mxu0 %v1142_v3 }
 0x784   :  { %3159 = vmatpush1.bf16.msra.mxu1 %v3698_v14  ;;  %1362 = vmatprep.mubr.f32.mxu1 %v4725_v47 }
 0x785   :  { %3161 = vmatprep.subr.bf16.mxu1 %v3713_v19  ;;  %3190 = vmatpush3.bf16.msra.mxu0 %v3983_v55 }
 0x786   :  { %3191 = vmatprep.subr.bf16.mxu0 %v4726_v59  ;;  %2664 = vmatprep.mubr.msk.f32.mxu0 %vm3616_vm0, %v4725_v47 }
 0x788   :  { %3163 = vmatpush1.bf16.msra.mxu1 %v3738_v27 }
 0x789   :  { %3165 = vmatprep.subr.bf16.mxu1 %v3751_v32  ;;  %3193 = vmatpush3.bf16.msra.mxu0 %v3995_v60 }
 0x78a   :  { %3194 = vmatprep.subr.bf16.mxu0 %v4726_v59 }
 0x78c   :  { %3167 = vmatpush1.bf16.msra.mxu1 %v3776_v40 }
 0x78d   :  { %3169 = vmatprep.subr.bf16.mxu1 %v3790_v45  ;;  %3196 = vmatpush3.bf16.msra.mxu0 %v4005_v63 }
 0x78e   :  { %3197 = vmatprep.subr.bf16.mxu0 %v4726_v59 }
 0x790   :  { %3171 = vmatpush1.bf16.msra.mxu1 %v3815_v53 }
 0x791   :  { %3173 = vmatprep.subr.bf16.mxu1 %v3829_v58  ;;  %3199 = vmatpush3.bf16.msra.mxu0 %v4015_v7 }
 0x792   :  { %3200 = vmatprep.subr.bf16.mxu0 %v4726_v59 }
 0x794   :  { %3175 = vmatpush1.bf16.msra.mxu1 %v3851_v1 }
 0x795   :  { %3177 = vmatprep.subr.bf16.mxu1 %v3865_v8  ;;  %3202 = vmatpush3.bf16.msra.mxu0 %v4025_v13 }
 0x796   :  { %3203 = vmatprep.subr.bf16.mxu0 %v4726_v59 }
 0x798   :  { %3179 = vmatpush1.bf16.msra.mxu1 %v3890_v21 }
 0x799   :  { %3181 = vmatprep.subr.bf16.mxu1 %v3906_v29  ;;  %3205 = vmatpush3.bf16.msra.mxu0 %v4035_v20 }
 0x79a   :  { %3206 = vmatprep.subr.bf16.mxu0 %v4726_v59 }
 0x79c   :  { %3183 = vmatpush1.bf16.msra.mxu1 %v3929_v38 }
 0x79d   :  { %3185 = vmatprep.subr.bf16.mxu1 %v3940_v44  ;;  %3208 = vmatpush3.bf16.msra.mxu0 %v4046_v30 }
 0x79e   :  { %3209 = vmatprep.subr.bf16.mxu0 %v4726_v59 }
 0x7a0   :  { %3187 = vmatpush1.bf16.msra.mxu1 %v3953_v49 }
 0x7a1   :  { %3213 = vmatprep.subr.bf16.mxu1 %v3673_v4  ;;  %3211 = vmatpush3.bf16.msra.mxu0 %v4056_v34 }
 0x7a2   :  { %3245 = vmatprep.subr.bf16.mxu0 %v3684_v9 }
 0x7a3   :  { %1363 = vmatmul.mubr.f32.vlgmr.msra.gmra.mrb[12].mxu1 %v1142_v3  ;;  %v2325_v3 = vld [vmem:[%s4691_s0 + $0x88] sm:$0xff] }
 0x7a4   :  { %3215 = vmatpush1.bf16.msra.mxu1 %v3686_v10  ;;  %1558 = vmatprep.mubr.f32.mxu1 %v4725_v47 }
 0x7a5   :  { %3217 = vmatprep.subr.bf16.mxu1 %v3711_v18 }
 0x7a8   :  { %3219 = vmatpush1.bf16.msra.mxu1 %v3725_v23 }
 0x7a9   :  { %3221 = vmatprep.subr.bf16.mxu1 %v3740_v28 }
 0x7ac   :  { %3223 = vmatpush1.bf16.msra.mxu1 %v3763_v36 }
 0x7ad   :  { %3225 = vmatprep.subr.bf16.mxu1 %v3778_v41 }
 0x7b0   :  { %3227 = vmatpush1.bf16.msra.mxu1 %v3811_v52 }
 0x7b1   :  { %3229 = vmatprep.subr.bf16.mxu1 %v3817_v54 }
 0x7b4   :  { %3231 = vmatpush1.bf16.msra.mxu1 %v3847_v0 }
 0x7b5   :  { %3233 = vmatprep.subr.bf16.mxu1 %v3853_v2 }
 0x7b8   :  { %3235 = vmatpush1.bf16.msra.mxu1 %v3883_v17 }
 0x7b9   :  { %3237 = vmatprep.subr.bf16.mxu1 %v3892_v22 }
 0x7bc   :  { %3239 = vmatpush1.bf16.msra.mxu1 %v3925_v37 }
 0x7bd   :  { %3241 = vmatprep.subr.bf16.mxu1 %v3931_v39 }
 0x7c0   :  { %3243 = vmatpush1.bf16.msra.mxu1 %v4750_v12 }
 0x7c1   :  { %3276 = vmatprep.subr.bf16.mxu1 %v4726_v59 }
 0x856   :  { %v1209_v11 = vpop.f32.mrb[10].mxu1  ;;  %v1293_v16 = vpop.f32.mrb[12].mxu0 }
 0x857   :  { %v1210_v50 = vadd.f32 %v4751_v43, %v1209_v11  ;;  %v2631_v35 = vpop.f32.mrb[11].mxu1  ;;  %v1295_v62 = vpop.f32.mrb[13].mxu0 }
 0x858   :  { %v1370_v35 = vadd.f32 %v2325_v3, %v1295_v62 }
 0x859   :  { %v1213_v5 = vmax.f32 %v1210_v50, 0.0  ;;  %v1369_v50 = vadd.f32 %v2324_v56, %v1293_v16  ;;  %v2326_v16 = vld [vmem:[%s4691_s0 + $0x90] sm:$0xff] }
 0x85b   :  { %v1214_v33 = vmul.f32 %v4752_v42, %v1213_v5  ;;  %v4757_v42 = vld [vmem:[#allocation7_spill] sm:$0xff] }
 0x85d   :  { %1215 = vadd.xlane.f32.xlu0 %v1214_v33  ;;  %v4756_v33 = vld [vmem:[#allocation6_spill] sm:$0xff] }
 0x876   :  { %v1364_v51 = vpop.f32.mrb[12].mxu1 }
 0x877   :  { %v1366_v25 = vpop.f32.mrb[13].mxu1  ;;  %v1371_v3 = vadd.f32 %v2326_v16, %v1364_v51 }
 0x8ea   :  { %v1216_v46 = vpop.xlane.xlu0 %1215 }
 0x8eb   :  { %v1217_v48 = vadd.f32 %v4753_v26, %v1216_v46 }
 0x8ed   :  { %v1218_v31 = vmax.f32 %v1217_v48, 0.0 }
 0x8ef   :  { %v4414_v15 = vadd.f32 %v1218_v31, %v4754_v61  ;;  %v2327_v61 = vld [vmem:[%s4691_s0 + $0x98] sm:$0xff] }
 0x8f0   :  { %v1372_v12 = vadd.f32 %v2327_v61, %v1366_v25 }
 0x8f1   :  { %4755 = vst [vmem:[#allocation5_spill] sm:$0xff] %v4414_v15  ;;  %2323 = vst.msk [vmem:[%s4695_s8 + $0x18] sm:$0xff] %vm419_vm1, %v4414_v15  ;;  %1375 = vperm.xlu1 %3481, %v4414_v15  }
 0x970   :  { %v1376_v11 = vpop.permute.xlu1 %1375 }
 0x971   :  { %v1378_v5 = vmul.f32 %v1376_v11, %v4732_v24  ;;  %v1379_v46 = vmul.f32 %v1376_v11, %v4756_v33  ;;  %v1381_v43 = vmul.f32 %v1376_v11, %v4757_v42  ;;  %v1380_v56 = vmul.f32 %v1376_v11, %v4082_v57 }
 0x973   :  { %v1382_v48 = vadd.f32 %v1378_v5, %v1369_v50  ;;  %v1383_v31 = vadd.f32 %v1379_v46, %v1370_v35  ;;  %v1385_v62 = vadd.f32 %v1381_v43, %v1372_v12  ;;  %v1384_v35 = vadd.f32 %v1380_v56, %v1371_v3 }
 0x975   :  { %v2328_v15 = vmul.f32 -1.442695, %v1382_v48  ;;  %v2329_v26 = vmul.f32 -1.442695, %v1383_v31  ;;  %v2330_v50 = vmul.f32 -1.442695, %v1385_v62 }
 0x976   :  { %v4759_v62 = vld [vmem:[#allocation8_spill] sm:$0xff] }
 0x977   :  { %3546 = vpow2.f32 %v2328_v15 }
 0x978   :  { %3548 = vpow2.f32 %v2329_v26 }
 0x979   :  { %3550 = vpow2.f32 %v2330_v50 }
 0x97a   :  { %3552 = vtanh.f32 %v1384_v35 }
 0x981   :  { %v3547_v5 = vpop.eup %3546 }
 0x982   :  { %v3549_v46 = vpop.eup %3548  ;;  %v1389_v33 = vadd.f32 1.0, %v3547_v5  ;;  %v4760_v5 = vld [vmem:[#allocation9_spill] sm:$0xff] }
 0x983   :  { %v1395_v48 = vadd.f32 1.0, %v3549_v46  ;;  %v3551_v25 = vpop.eup %3550 }
 0x984   :  { %3554 = vrcp.f32 %v1389_v33  ;;  %v3553_v26 = vpop.eup %3552  ;;  %v1402_v61 = vadd.f32 1.0, %v3551_v25 }
 0x985   :  { %3556 = vrcp.f32 %v1395_v48 }
 0x986   :  { %3558 = vrcp.f32 %v1402_v61 }
 0x98e   :  { %v3555_v15 = vpop.eup %3554 }
 0x98f   :  { %v3557_v31 = vpop.eup %3556  ;;  %v1406_v42 = vmul.f32 %v3555_v15, %v3553_v26  ;;  %v4761_v15 = vld [vmem:[#allocation10_spill] sm:$0xff] }
 0x990   :  { %v1405_v12 = vmul.f32 %v3557_v31, %v4355_v6  ;;  %v3559_v51 = vpop.eup %3558  ;;  %v4758_v6 = vld [vmem:[#allocation4_spill] sm:$0xff] }
 0x992   :  { %v4439_v43 = vadd.f32 %v1406_v42, %v1405_v12  ;;  %v4762_v12 = vld [vmem:[#allocation5_spill] sm:$0xff] }
 0x994   :  { %3560 = vtanh.f32 %v4439_v43 }
 0x99e   :  { %v3561_v11 = vpop.eup %3560 }
 0x99f   :  { %v1409_v16 = vmul.f32 %v3561_v11, %v3559_v51  ;;  %v2332_v11 = vld [vmem:[%s4691_s0 + $0xa0] sm:$0xff] }
 0x9a1   :  { %2665 = vmatmul.mubr.f32.vlgmr.msra.gmra.mrb[14].mxu0 %v1409_v16  ;;  %1559 = vmatmul.mubr.f32.vlgmr.msra.gmra.mrb[14].mxu1 %v1409_v16 }
 0x9a2   :  { %3247 = vmatpush1.bf16.msra.mxu0 %v3698_v14  ;;  %1629 = vmatprep.mubr.f32.mxu0 %v4725_v47 }
 0x9a3   :  { %3249 = vmatprep.subr.bf16.mxu0 %v3713_v19  ;;  %3278 = vmatpush3.bf16.msra.mxu1 %v3983_v55 }
 0x9a4   :  { %3279 = vmatprep.subr.bf16.mxu1 %v4726_v59  ;;  %2699 = vmatprep.mubr.msk.f32.mxu1 %vm3616_vm0, %v4725_v47 }
 0x9a6   :  { %3251 = vmatpush1.bf16.msra.mxu0 %v3738_v27 }
 0x9a7   :  { %3253 = vmatprep.subr.bf16.mxu0 %v3751_v32  ;;  %3281 = vmatpush3.bf16.msra.mxu1 %v3995_v60 }
 0x9a8   :  { %3282 = vmatprep.subr.bf16.mxu1 %v4726_v59 }
 0x9aa   :  { %3255 = vmatpush1.bf16.msra.mxu0 %v3776_v40 }
 0x9ab   :  { %3257 = vmatprep.subr.bf16.mxu0 %v3790_v45  ;;  %3284 = vmatpush3.bf16.msra.mxu1 %v4005_v63 }
 0x9ac   :  { %3285 = vmatprep.subr.bf16.mxu1 %v4726_v59 }
 0x9ae   :  { %3259 = vmatpush1.bf16.msra.mxu0 %v3815_v53 }
 0x9af   :  { %3261 = vmatprep.subr.bf16.mxu0 %v3829_v58  ;;  %3287 = vmatpush3.bf16.msra.mxu1 %v4015_v7 }
 0x9b0   :  { %3288 = vmatprep.subr.bf16.mxu1 %v4726_v59 }
 0x9b2   :  { %3263 = vmatpush1.bf16.msra.mxu0 %v3851_v1 }
 0x9b3   :  { %3265 = vmatprep.subr.bf16.mxu0 %v3865_v8  ;;  %3290 = vmatpush3.bf16.msra.mxu1 %v4025_v13 }
 0x9b4   :  { %3291 = vmatprep.subr.bf16.mxu1 %v4726_v59 }
 0x9b6   :  { %3267 = vmatpush1.bf16.msra.mxu0 %v3890_v21 }
 0x9b7   :  { %3269 = vmatprep.subr.bf16.mxu0 %v3906_v29  ;;  %3293 = vmatpush3.bf16.msra.mxu1 %v4035_v20 }
 0x9b8   :  { %3294 = vmatprep.subr.bf16.mxu1 %v4726_v59 }
 0x9ba   :  { %3271 = vmatpush1.bf16.msra.mxu0 %v3929_v38 }
 0x9bb   :  { %3273 = vmatprep.subr.bf16.mxu0 %v3940_v44  ;;  %3296 = vmatpush3.bf16.msra.mxu1 %v4046_v30 }
 0x9bc   :  { %3297 = vmatprep.subr.bf16.mxu1 %v4726_v59 }
 0x9be   :  { %3275 = vmatpush1.bf16.msra.mxu0 %v3953_v49 }
 0x9bf   :  { %3301 = vmatprep.subr.bf16.mxu0 %v3673_v4  ;;  %3299 = vmatpush3.bf16.msra.mxu1 %v4056_v34 }
 0x9c0   :  { %3333 = vmatprep.subr.bf16.mxu1 %v3684_v9 }
 0x9c1   :  { %1630 = vmatmul.mubr.f32.vlgmr.msra.gmra.mrb[16].mxu0 %v1409_v16  ;;  %v2333_v16 = vld [vmem:[%s4691_s0 + $0xa8] sm:$0xff] }
 0x9c2   :  { %3303 = vmatpush1.bf16.msra.mxu0 %v3686_v10  ;;  %1825 = vmatprep.mubr.f32.mxu0 %v4725_v47 }
 0x9c3   :  { %3305 = vmatprep.subr.bf16.mxu0 %v3711_v18 }
 0x9c6   :  { %3307 = vmatpush1.bf16.msra.mxu0 %v3725_v23 }
 0x9c7   :  { %3309 = vmatprep.subr.bf16.mxu0 %v3740_v28 }
 0x9ca   :  { %3311 = vmatpush1.bf16.msra.mxu0 %v3763_v36 }
 0x9cb   :  { %3313 = vmatprep.subr.bf16.mxu0 %v3778_v41 }
 0x9ce   :  { %3315 = vmatpush1.bf16.msra.mxu0 %v3811_v52 }
 0x9cf   :  { %3317 = vmatprep.subr.bf16.mxu0 %v3817_v54 }
 0x9d2   :  { %3319 = vmatpush1.bf16.msra.mxu0 %v3847_v0 }
 0x9d3   :  { %3321 = vmatprep.subr.bf16.mxu0 %v3853_v2 }
 0x9d6   :  { %3323 = vmatpush1.bf16.msra.mxu0 %v3883_v17 }
 0x9d7   :  { %3325 = vmatprep.subr.bf16.mxu0 %v3892_v22 }
 0x9da   :  { %3327 = vmatpush1.bf16.msra.mxu0 %v3925_v37 }
 0x9db   :  { %3329 = vmatprep.subr.bf16.mxu0 %v3931_v39 }
 0x9de   :  { %3331 = vmatpush1.bf16.msra.mxu0 %v4758_v6 }
 0x9df   :  { %3364 = vmatprep.subr.bf16.mxu0 %v4726_v59 }
 0xa74   :  { %v1476_v42 = vpop.f32.mrb[14].mxu0  ;;  %v1560_v33 = vpop.f32.mrb[14].mxu1 }
 0xa75   :  { %v1477_v56 = vadd.f32 %v4759_v62, %v1476_v42  ;;  %v2666_v3 = vpop.f32.mrb[15].mxu0  ;;  %v1562_v50 = vpop.f32.mrb[15].mxu1  ;;  %v1636_v62 = vadd.f32 %v2332_v11, %v1560_v33  ;;  %v2334_v33 = vld [vmem:[%s4691_s0 + $0xb0] sm:$0xff] }
 0xa77   :  { %v1480_v35 = vmax.f32 %v1477_v56, 0.0  ;;  %v1637_v56 = vadd.f32 %v2333_v16, %v1562_v50 }
 0xa79   :  { %v1481_v46 = vmul.f32 %v4760_v5, %v1480_v35  ;;  %v4764_v35 = vld [vmem:[#allocation6_spill] sm:$0xff] }
 0xa7b   :  { %1482 = vadd.xlane.f32.xlu1 %v1481_v46 }
 0xa94   :  { %v1631_v48 = vpop.f32.mrb[16].mxu0 }
 0xa95   :  { %v1633_v25 = vpop.f32.mrb[17].mxu0  ;;  %v1638_v16 = vadd.f32 %v2334_v33, %v1631_v48 }
 0xb08   :  { %v1483_v26 = vpop.xlane.xlu1 %1482 }
 0xb09   :  { %v1484_v31 = vadd.f32 %v4761_v15, %v1483_v26  ;;  %v2335_v15 = vld [vmem:[%s4691_s0 + $0xb8] sm:$0xff] }
 0xb0a   :  { %v1639_v6 = vadd.f32 %v2335_v15, %v1633_v25 }
 0xb0b   :  { %v1485_v61 = vmax.f32 %v1484_v31, 0.0 }
 0xb0d   :  { %v4498_v51 = vadd.f32 %v1485_v61, %v4762_v12  ;;  %v4765_v12 = vld [vmem:[#allocation7_spill] sm:$0xff] }
 0xb0f   :  { %4763 = vst [vmem:[#allocation3_spill] sm:$0xff] %v4498_v51  ;;  %2331 = vst.msk [vmem:[%s4695_s8 + $0x20] sm:$0xff] %vm419_vm1, %v4498_v51  ;;  %1642 = vperm.xlu0 %3480, %v4498_v51  }
 0xb8e   :  { %v1643_v42 = vpop.permute.xlu0 %1642 }
 0xb8f   :  { %v1645_v3 = vmul.f32 %v1643_v42, %v4732_v24  ;;  %v1646_v5 = vmul.f32 %v1643_v42, %v4764_v35  ;;  %v1648_v51 = vmul.f32 %v1643_v42, %v4765_v12  ;;  %v1647_v11 = vmul.f32 %v1643_v42, %v4082_v57 }
 0xb91   :  { %v1649_v46 = vadd.f32 %v1645_v3, %v1636_v62  ;;  %v1650_v26 = vadd.f32 %v1646_v5, %v1637_v56  ;;  %v1652_v50 = vadd.f32 %v1648_v51, %v1639_v6  ;;  %v1651_v56 = vadd.f32 %v1647_v11, %v1638_v16 }
 0xb93   :  { %v2336_v31 = vmul.f32 -1.442695, %v1649_v46  ;;  %v2337_v61 = vmul.f32 -1.442695, %v1650_v26  ;;  %v2338_v62 = vmul.f32 -1.442695, %v1652_v50 }
 0xb94   :  { %v2341_v50 = vld [vmem:[%s4691_s0 + $0xc8] sm:$0xff] }
 0xb95   :  { %3562 = vpow2.f32 %v2336_v31 }
 0xb96   :  { %3564 = vpow2.f32 %v2337_v61 }
 0xb97   :  { %3566 = vpow2.f32 %v2338_v62 }
 0xb98   :  { %3568 = vtanh.f32 %v1651_v56 }
 0xb9f   :  { %v3563_v3 = vpop.eup %3562 }
 0xba0   :  { %v3565_v5 = vpop.eup %3564  ;;  %v1656_v35 = vadd.f32 1.0, %v3563_v3  ;;  %v4768_v3 = vld [vmem:[#allocation6_spill] sm:$0xff] }
 0xba1   :  { %v1662_v46 = vadd.f32 1.0, %v3565_v5  ;;  %v3567_v25 = vpop.eup %3566 }
 0xba2   :  { %3570 = vrcp.f32 %v1656_v35  ;;  %v3569_v26 = vpop.eup %3568  ;;  %v1669_v61 = vadd.f32 1.0, %v3567_v25 }
 0xba3   :  { %3572 = vrcp.f32 %v1662_v46 }
 0xba4   :  { %3574 = vrcp.f32 %v1669_v61  ;;  %v4769_v61 = vld [vmem:[#allocation7_spill] sm:$0xff] }
 0xbac   :  { %v3571_v15 = vpop.eup %3570 }
 0xbad   :  { %v3573_v31 = vpop.eup %3572  ;;  %v1673_v12 = vmul.f32 %v3571_v15, %v3569_v26  ;;  %v2343_v26 = vld [vmem:[%s4691_s0 + $0xd8] sm:$0xff] }
 0xbae   :  { %v1672_v6 = vmul.f32 %v3573_v31, %v4439_v43  ;;  %v3575_v48 = vpop.eup %3574  ;;  %v4767_v43 = vld [vmem:[#allocation3_spill] sm:$0xff] }
 0xbb0   :  { %v4523_v51 = vadd.f32 %v1673_v12, %v1672_v6  ;;  %v2340_v12 = vld [vmem:[%s4691_s0 + $0xc0] sm:$0xff] }
 0xbb2   :  { %3576 = vtanh.f32 %v4523_v51 }
 0xbbc   :  { %v3577_v42 = vpop.eup %3576 }
 0xbbd   :  { %v1676_v33 = vmul.f32 %v3577_v42, %v3575_v48  ;;  %v2342_v42 = vld [vmem:[%s4691_s0 + $0xd0] sm:$0xff] }
 0xbbf   :  { %2700 = vmatmul.mubr.f32.vlgmr.msra.gmra.mrb[16].mxu1 %v1676_v33  ;;  %1826 = vmatmul.mubr.f32.vlgmr.msra.gmra.mrb[18].mxu0 %v1676_v33 }
 0xbc0   :  { %3335 = vmatpush1.bf16.msra.mxu1 %v3698_v14  ;;  %1896 = vmatprep.mubr.f32.mxu1 %v4725_v47 }
 0xbc1   :  { %3337 = vmatprep.subr.bf16.mxu1 %v3713_v19  ;;  %3366 = vmatpush3.bf16.msra.mxu0 %v3983_v55 }
 0xbc2   :  { %3367 = vmatprep.subr.bf16.mxu0 %v4726_v59  ;;  %2734 = vmatprep.mubr.msk.f32.mxu0 %vm3616_vm0, %v4725_v47 }
 0xbc4   :  { %3339 = vmatpush1.bf16.msra.mxu1 %v3738_v27 }
 0xbc5   :  { %3341 = vmatprep.subr.bf16.mxu1 %v3751_v32  ;;  %3369 = vmatpush3.bf16.msra.mxu0 %v3995_v60 }
 0xbc6   :  { %3370 = vmatprep.subr.bf16.mxu0 %v4726_v59 }
 0xbc8   :  { %3343 = vmatpush1.bf16.msra.mxu1 %v3776_v40 }
 0xbc9   :  { %3345 = vmatprep.subr.bf16.mxu1 %v3790_v45  ;;  %3372 = vmatpush3.bf16.msra.mxu0 %v4005_v63 }
 0xbca   :  { %3373 = vmatprep.subr.bf16.mxu0 %v4726_v59 }
 0xbcc   :  { %3347 = vmatpush1.bf16.msra.mxu1 %v3815_v53 }
 0xbcd   :  { %3349 = vmatprep.subr.bf16.mxu1 %v3829_v58  ;;  %3375 = vmatpush3.bf16.msra.mxu0 %v4015_v7 }
 0xbce   :  { %3376 = vmatprep.subr.bf16.mxu0 %v4726_v59 }
 0xbd0   :  { %3351 = vmatpush1.bf16.msra.mxu1 %v3851_v1 }
 0xbd1   :  { %3353 = vmatprep.subr.bf16.mxu1 %v3865_v8  ;;  %3378 = vmatpush3.bf16.msra.mxu0 %v4025_v13 }
 0xbd2   :  { %3379 = vmatprep.subr.bf16.mxu0 %v4726_v59 }
 0xbd4   :  { %3355 = vmatpush1.bf16.msra.mxu1 %v3890_v21 }
 0xbd5   :  { %3357 = vmatprep.subr.bf16.mxu1 %v3906_v29  ;;  %3381 = vmatpush3.bf16.msra.mxu0 %v4035_v20 }
 0xbd6   :  { %3382 = vmatprep.subr.bf16.mxu0 %v4726_v59 }
 0xbd8   :  { %3359 = vmatpush1.bf16.msra.mxu1 %v3929_v38 }
 0xbd9   :  { %3361 = vmatprep.subr.bf16.mxu1 %v3940_v44  ;;  %3384 = vmatpush3.bf16.msra.mxu0 %v4046_v30 }
 0xbda   :  { %3385 = vmatprep.subr.bf16.mxu0 %v4726_v59 }
 0xbdc   :  { %3363 = vmatpush1.bf16.msra.mxu1 %v3953_v49 }
 0xbdd   :  { %3389 = vmatprep.subr.bf16.mxu1 %v3673_v4  ;;  %3387 = vmatpush3.bf16.msra.mxu0 %v4056_v34  ;;  %v4766_v4 = vld [vmem:[#allocation4_spill] sm:$0xff] }
 0xbde   :  { %3421 = vmatprep.subr.bf16.mxu0 %v3684_v9 }
 0xbdf   :  { %1897 = vmatmul.mubr.f32.vlgmr.msra.gmra.mrb[18].mxu1 %v1676_v33 }
 0xbe0   :  { %3391 = vmatpush1.bf16.msra.mxu1 %v3686_v10  ;;  %2092 = vmatprep.mubr.f32.mxu1 %v4725_v47 }
 0xbe1   :  { %3393 = vmatprep.subr.bf16.mxu1 %v3711_v18  ;;  %v4581_v18 = vld [vmem:[%s4693_s5] ss:$0 sm:$0xff] }
 0xbe4   :  { %3395 = vmatpush1.bf16.msra.mxu1 %v3725_v23 }
 0xbe5   :  { %3397 = vmatprep.subr.bf16.mxu1 %v3740_v28 }
 0xbe8   :  { %3399 = vmatpush1.bf16.msra.mxu1 %v3763_v36 }
 0xbe9   :  { %3401 = vmatprep.subr.bf16.mxu1 %v3778_v41 }
 0xbec   :  { %3403 = vmatpush1.bf16.msra.mxu1 %v3811_v52  ;;  %v4587_v52 = vld [vmem:[%s4694_s6] ss:$0 sm:$0xff] }
 0xbed   :  { %3405 = vmatprep.subr.bf16.mxu1 %v3817_v54 }
 0xbf0   :  { %3407 = vmatpush1.bf16.msra.mxu1 %v3847_v0 }
 0xbf1   :  { %3409 = vmatprep.subr.bf16.mxu1 %v3853_v2 }
 0xbf4   :  { %3411 = vmatpush1.bf16.msra.mxu1 %v3883_v17 }
 0xbf5   :  { %3413 = vmatprep.subr.bf16.mxu1 %v3892_v22  ;;  %v4590_v22 = vld [vmem:[#allocation2] ss:$0 sm:$0xff] }
 0xbf8   :  { %3415 = vmatpush1.bf16.msra.mxu1 %v3925_v37 }
 0xbf9   :  { %3417 = vmatprep.subr.bf16.mxu1 %v3931_v39 }
 0xbfc   :  { %3419 = vmatpush1.bf16.msra.mxu1 %v4766_v4 }
 0xbfd   :  { %3452 = vmatprep.subr.bf16.mxu1 %v4726_v59 }
 0xc92   :  { %v1743_v9 = vpop.f32.mrb[16].mxu1  ;;  %v1827_v10 = vpop.f32.mrb[18].mxu0 }
 0xc93   :  { %v1744_v23 = vadd.f32 %v4581_v18, %v1743_v9  ;;  %v2701_v28 = vpop.f32.mrb[17].mxu1  ;;  %v1829_v36 = vpop.f32.mrb[19].mxu0  ;;  %v1903_v16 = vadd.f32 %v2340_v12, %v1827_v10 }
 0xc94   :  { %v1904_v62 = vadd.f32 %v2341_v50, %v1829_v36 }
 0xc95   :  { %v1747_v41 = vmax.f32 %v1744_v23, 0.0 }
 0xc97   :  { %v1748_v54 = vmul.f32 %v4587_v52, %v1747_v41 }
 0xc99   :  { %1749 = vadd.xlane.f32.xlu1 %v1748_v54 }
 0xcb2   :  { %v1898_v0 = vpop.f32.mrb[18].mxu1 }
 0xcb3   :  { %v1900_v2 = vpop.f32.mrb[19].mxu1  ;;  %v1905_v9 = vadd.f32 %v2342_v42, %v1898_v0 }
 0xcb4   :  { %v1906_v48 = vadd.f32 %v2343_v26, %v1900_v2 }
 0xd26   :  { %v1750_v17 = vpop.xlane.xlu1 %1749 }
 0xd27   :  { %v1751_v37 = vadd.f32 %v4590_v22, %v1750_v17 }
 0xd29   :  { %v1752_v39 = vmax.f32 %v1751_v37, 0.0 }
 0xd2b   :  { %v4594_v35 = vadd.f32 %v1752_v39, %v4767_v43 }
 0xd2d   :  { %2339 = vst.msk [vmem:[%s4695_s8 + $0x28] sm:$0xff] %vm419_vm1, %v4594_v35  ;;  %1909 = vperm.xlu1 %3481, %v4594_v35  }
 0xdac   :  { %v1910_v11 = vpop.permute.xlu1 %1909 }
 0xdad   :  { %v1912_v56 = vmul.f32 %v1910_v11, %v4732_v24  ;;  %v1913_v5 = vmul.f32 %v1910_v11, %v4768_v3  ;;  %v1915_v6 = vmul.f32 %v1910_v11, %v4769_v61  ;;  %v1914_v4 = vmul.f32 %v1910_v11, %v4082_v57 }
 0xdaf   :  { %v1916_v46 = vadd.f32 %v1912_v56, %v1903_v16  ;;  %v1917_v25 = vadd.f32 %v1913_v5, %v1904_v62  ;;  %v1919_v33 = vadd.f32 %v1915_v6, %v1906_v48  ;;  %v1918_v23 = vadd.f32 %v1914_v4, %v1905_v9  ;;  %v2350_v56 = vld [vmem:[%s4691_s0 + $0xf0] sm:$0xff] }
 0xdb1   :  { %v2344_v15 = vmul.f32 -1.442695, %v1916_v46  ;;  %v2345_v31 = vmul.f32 -1.442695, %v1917_v25  ;;  %v2346_v10 = vmul.f32 -1.442695, %v1919_v33 }
 0xdb3   :  { %3578 = vpow2.f32 %v2344_v15 }
 0xdb4   :  { %3580 = vpow2.f32 %v2345_v31 }
 0xdb5   :  { %3582 = vpow2.f32 %v2346_v10 }
 0xdb6   :  { %3584 = vtanh.f32 %v1918_v23 }
 0xdbd   :  { %v3579_v28 = vpop.eup %3578 }
 0xdbe   :  { %v3581_v36 = vpop.eup %3580  ;;  %v1923_v41 = vadd.f32 1.0, %v3579_v28 }
 0xdbf   :  { %v1929_v54 = vadd.f32 1.0, %v3581_v36  ;;  %v3583_v2 = vpop.eup %3582 }
 0xdc0   :  { %3586 = vrcp.f32 %v1923_v41  ;;  %v3585_v17 = vpop.eup %3584  ;;  %v1936_v43 = vadd.f32 1.0, %v3583_v2 }
 0xdc1   :  { %3588 = vrcp.f32 %v1929_v54 }
 0xdc2   :  { %3590 = vrcp.f32 %v1936_v43 }
 0xdca   :  { %v3587_v37 = vpop.eup %3586 }
 0xdcb   :  { %v3589_v39 = vpop.eup %3588  ;;  %v1940_v12 = vmul.f32 %v3587_v37, %v3585_v17 }
 0xdcc   :  { %v1939_v50 = vmul.f32 %v3589_v39, %v4523_v51  ;;  %v3591_v0 = vpop.eup %3590 }
 0xdce   :  { %v4619_v11 = vadd.f32 %v1940_v12, %v1939_v50 }
 0xdd0   :  { %3592 = vtanh.f32 %v4619_v11 }
 0xdda   :  { %v3593_v16 = vpop.eup %3592 }
 0xddb   :  { %v1943_v62 = vmul.f32 %v3593_v16, %v3591_v0 }
 0xddd   :  { %2735 = vmatmul.mubr.f32.vlgmr.msra.gmra.mrb[20].mxu0 %v1943_v62  ;;  %2093 = vmatmul.mubr.f32.vlgmr.msra.gmra.mrb[20].mxu1 %v1943_v62 }
 0xdde   :  { %3423 = vmatpush1.bf16.msra.mxu0 %v3698_v14  ;;  %2163 = vmatprep.mubr.f32.mxu0 %v4725_v47 }
 0xddf   :  { %3425 = vmatprep.subr.bf16.mxu0 %v3713_v19  ;;  %3454 = vmatpush3.bf16.msra.mxu1 %v3983_v55 }
 0xde0   :  { %3455 = vmatprep.subr.bf16.mxu1 %v4726_v59  ;;  %2769 = vmatprep.mubr.msk.f32.mxu1 %vm3616_vm0, %v4725_v47 }
 0xde2   :  { %3427 = vmatpush1.bf16.msra.mxu0 %v3738_v27 }
 0xde3   :  { %3429 = vmatprep.subr.bf16.mxu0 %v3751_v32  ;;  %3457 = vmatpush3.bf16.msra.mxu1 %v3995_v60 }
 0xde4   :  { %3458 = vmatprep.subr.bf16.mxu1 %v4726_v59 }
 0xde6   :  { %3431 = vmatpush1.bf16.msra.mxu0 %v3776_v40 }
 0xde7   :  { %3433 = vmatprep.subr.bf16.mxu0 %v3790_v45  ;;  %3460 = vmatpush3.bf16.msra.mxu1 %v4005_v63 }
 0xde8   :  { %3461 = vmatprep.subr.bf16.mxu1 %v4726_v59 }
 0xdea   :  { %3435 = vmatpush1.bf16.msra.mxu0 %v3815_v53 }
 0xdeb   :  { %3437 = vmatprep.subr.bf16.mxu0 %v3829_v58  ;;  %3463 = vmatpush3.bf16.msra.mxu1 %v4015_v7 }
 0xdec   :  { %3464 = vmatprep.subr.bf16.mxu1 %v4726_v59 }
 0xdee   :  { %3439 = vmatpush1.bf16.msra.mxu0 %v3851_v1 }
 0xdef   :  { %3441 = vmatprep.subr.bf16.mxu0 %v3865_v8  ;;  %3466 = vmatpush3.bf16.msra.mxu1 %v4025_v13 }
 0xdf0   :  { %3467 = vmatprep.subr.bf16.mxu1 %v4726_v59 }
 0xdf2   :  { %3443 = vmatpush1.bf16.msra.mxu0 %v3890_v21 }
 0xdf3   :  { %3445 = vmatprep.subr.bf16.mxu0 %v3906_v29  ;;  %3469 = vmatpush3.bf16.msra.mxu1 %v4035_v20 }
 0xdf4   :  { %3470 = vmatprep.subr.bf16.mxu1 %v4726_v59 }
 0xdf6   :  { %3447 = vmatpush1.bf16.msra.mxu0 %v3929_v38 }
 0xdf7   :  { %3449 = vmatprep.subr.bf16.mxu0 %v3940_v44  ;;  %3472 = vmatpush3.bf16.msra.mxu1 %v4046_v30  ;;  %v2348_v44 = vld [vmem:[%s4691_s0 + $0xe0] sm:$0xff] }
 0xdf8   :  { %3473 = vmatprep.subr.bf16.mxu1 %v4726_v59 }
 0xdfa   :  { %3451 = vmatpush1.bf16.msra.mxu0 %v3953_v49  ;;  %v2349_v49 = vld [vmem:[%s4691_s0 + $0xe8] sm:$0xff] }
 0xdfb   :  { %3475 = vmatpush3.bf16.msra.mxu1 %v4056_v34  ;;  %v2351_v34 = vld [vmem:[%s4691_s0 + $0xf8] sm:$0xff] }
 0xdfd   :  { %2164 = vmatmul.mubr.f32.vlgmr.msra.gmra.mrb[22].mxu0 %v1943_v62 }
 0xeb0   :  { %v2010_v14 = vpop.f32.mrb[20].mxu0  ;;  %v2094_v19 = vpop.f32.mrb[20].mxu1 }
 0xeb1   :  { %v2011_v27 = vadd.f32 %v4581_v18, %v2010_v14  ;;  %v2736_v32 = vpop.f32.mrb[21].mxu0  ;;  %v2096_v40 = vpop.f32.mrb[21].mxu1  ;;  %v2170_v60 = vadd.f32 %v2348_v44, %v2094_v19 }
 0xeb2   :  { %v2171_v63 = vadd.f32 %v2349_v49, %v2096_v40 }
 0xeb3   :  { %v2014_v45 = vmax.f32 %v2011_v27, 0.0 }
 0xeb5   :  { %v2015_v53 = vmul.f32 %v4587_v52, %v2014_v45 }
 0xeb7   :  { %2016 = vadd.xlane.f32.xlu0 %v2015_v53 }
 0xed0   :  { %v2165_v58 = vpop.f32.mrb[22].mxu0 }
 0xed1   :  { %v2167_v1 = vpop.f32.mrb[23].mxu0  ;;  %v2172_v5 = vadd.f32 %v2350_v56, %v2165_v58 }
 0xf44   :  { %v2017_v8 = vpop.xlane.xlu0 %2016 }
 0xf45   :  { %v2018_v21 = vadd.f32 %v4590_v22, %v2017_v8 }
 0xf47   :  { %v2019_v29 = vmax.f32 %v2018_v21, 0.0 }
 0xf49   :  { %v2020_v38 = vadd.f32 %v2019_v29, %v4594_v35  ;;  %v2173_v35 = vadd.f32 %v2351_v34, %v2167_v1 }
 0xf4b   :  { %2347 = vst.msk [vmem:[%s4695_s8 + $0x30] sm:$0xff] %vm419_vm1, %v2020_v38  ;;  %2176 = vperm.xlu1 %3481, %v2020_v38  }
 0xfca   :  { %v2177_v55 = vpop.permute.xlu1 %2176 }
 0xfcb   :  { %v2179_v7 = vmul.f32 %v2177_v55, %v4732_v24  ;;  %v2180_v13 = vmul.f32 %v2177_v55, %v4768_v3  ;;  %v2182_v51 = vmul.f32 %v2177_v55, %v4769_v61  ;;  %v2181_v3 = vmul.f32 %v2177_v55, %v4082_v57 }
 0xfcd   :  { %v2183_v20 = vadd.f32 %v2179_v7, %v2170_v60  ;;  %v2184_v30 = vadd.f32 %v2180_v13, %v2171_v63  ;;  %v2186_v24 = vadd.f32 %v2182_v51, %v2173_v35  ;;  %v2185_v25 = vadd.f32 %v2181_v3, %v2172_v5 }
 0xfcf   :  { %v2352_v47 = vmul.f32 -1.442695, %v2183_v20  ;;  %v2353_v59 = vmul.f32 -1.442695, %v2184_v30  ;;  %v2354_v46 = vmul.f32 -1.442695, %v2186_v24 }
 0xfd1   :  { %3594 = vpow2.f32 %v2352_v47 }
 0xfd2   :  { %3596 = vpow2.f32 %v2353_v59 }
 0xfd3   :  { %3598 = vpow2.f32 %v2354_v46 }
 0xfd4   :  { %3600 = vtanh.f32 %v2185_v25 }
 0xfdb   :  { %v3595_v26 = vpop.eup %3594 }
 0xfdc   :  { %v3597_v15 = vpop.eup %3596  ;;  %v2190_v31 = vadd.f32 1.0, %v3595_v26 }
 0xfdd   :  { %v2196_v6 = vadd.f32 1.0, %v3597_v15  ;;  %v3599_v61 = vpop.eup %3598 }
 0xfde   :  { %3602 = vrcp.f32 %v2190_v31  ;;  %v3601_v48 = vpop.eup %3600  ;;  %v2203_v4 = vadd.f32 1.0, %v3599_v61 }
 0xfdf   :  { %3604 = vrcp.f32 %v2196_v6 }
 0xfe0   :  { %3606 = vrcp.f32 %v2203_v4 }
 0xfe8   :  { %v3603_v42 = vpop.eup %3602 }
 0xfe9   :  { %v3605_v33 = vpop.eup %3604  ;;  %v2207_v9 = vmul.f32 %v3603_v42, %v3601_v48 }
 0xfea   :  { %v2206_v10 = vmul.f32 %v3605_v33, %v4619_v11  ;;  %v3607_v23 = vpop.eup %3606 }
 0xfec   :  { %v2208_v57 = vadd.f32 %v2207_v9, %v2206_v10 }
 0xfee   :  { %3608 = vtanh.f32 %v2208_v57 }
 0xff8   :  { %v3609_v28 = vpop.eup %3608 }
 0xff9   :  { %v2210_v36 = vmul.f32 %v3609_v28, %v3607_v23 }
 0xffb   :  { %2770 = vmatmul.mubr.f32.vlgmr.msra.gmra.mrb[22].mxu1 %v2210_v36 }
0x10ce   :  { %v2277_v41 = vpop.f32.mrb[22].mxu1 }
0x10cf   :  { %v2278_v54 = vadd.f32 %v4581_v18, %v2277_v41  ;;  %v2771_v2 = vpop.f32.mrb[23].mxu1 }
0x10d1   :  { %v2281_v17 = vmax.f32 %v2278_v54, 0.0 }
0x10d3   :  { %v2282_v37 = vmul.f32 %v4587_v52, %v2281_v17 }
0x10d5   :  { %2283 = vadd.xlane.f32.xlu1 %v2282_v37 }
0x1162   :  { %v2284_v39 = vpop.xlane.xlu1 %2283 }
0x1163   :  { %v2285_v43 = vadd.f32 %v4590_v22, %v2284_v39 }
0x1165   :  { %v2286_v12 = vmax.f32 %v2285_v43, 0.0 }
0x1167   :  { %v2287_v50 = vadd.f32 %v2286_v12, %v2020_v38 }
0x1169   :  { %2355 = vst.msk [vmem:[%s4695_s8 + $0x38] sm:$0xff] %vm419_vm1, %v2287_v50 }

</bundles_post_ra>
